<compile_context>
chip_gen: v5e
topology: v5e:2x2
jax: 0.10.0
libtpu: 0.0.40
codegen_flags: <defaults>
</compile_context>

<pallas_src>
import functools

import jax
import jax.numpy as jnp
from jax.experimental import pallas as pl
from jax.experimental.pallas import tpu as pltpu

_LANES = 128


def _round_up(x, m):
    return ((x + m - 1) // m) * m


def _largest_divisor_leq(n, cap):
    cap = max(1, min(n, cap))
    for d in range(cap, 0, -1):
        if n % d == 0:
            return d
    return 1


def _double_conv_kernel(x_ref, w1_ref, b1_ref, w2_ref, b2_ref, o_ref,
                        mid_ref, acc1_ref, acc2_ref, *, tile_h, width):
    """Fused (conv3x3 + folded-BN + ReLU) x2 for one batch / one row tile.

    x_ref:   (1, H+4, W+2, Cin_p)    whole zero-padded image (compute dtype)
    w1_ref:  (3, 3*Cin_p, Cmid_p)    dy-folded conv1 weights, BN1 scale folded
    b1_ref:  (1, Cmid_p)             BN1 bias (f32)
    w2_ref:  (3, 3*Cmid_p, Cout_p)   dy-folded conv2 weights, BN2 scale folded
    b2_ref:  (1, Cout_p)             BN2 bias (f32)
    o_ref:   (1, tile_h, W, Cout_p)  output row tile
    mid_ref: (tile_h+2, W+2, Cmid_p) f32 scratch: zero-padded mid activation
    acc1_ref/acc2_ref: f32 VMEM accumulators
    """
    t = pl.program_id(1)
    num_t = pl.num_programs(1)
    th, w = tile_h, width
    cin_p = x_ref.shape[-1]
    cmid_p = w1_ref.shape[-1]
    cout_p = o_ref.shape[-1]
    mxu_dtype = w1_ref.dtype

    # ---------------- stage 1: conv1 -> BN1 -> ReLU ----------------
    # Compute tile_h+2 mid rows (1-row halo recomputed per tile) from a
    # (tile_h+4)-row window of the padded input.
    row0 = pl.multiple_of(t * th, th)
    xwin = x_ref[0, pl.ds(row0, th + 4), :, :].astype(jnp.float32)
    for dx in range(3):                       # one W shift per dx tap
        col = xwin[:, dx:dx + w, :]           # (th+4, W, Cin_p)
        patch = jnp.concatenate(              # dy taps folded into K
            [col[0:th + 2], col[1:th + 3], col[2:th + 4]], axis=-1)
        patch = patch.reshape((th + 2) * w, 3 * cin_p).astype(mxu_dtype)
        prod = jnp.dot(patch, w1_ref[dx], preferred_element_type=jnp.float32)
        if dx == 0:
            acc1_ref[...] = prod
        else:
            acc1_ref[...] += prod
    mid = jnp.maximum(acc1_ref[...] + b1_ref[...], 0.0)    # f32 epilogue
    mid = mid.reshape(th + 2, w, cmid_p)

    # Zero-padded mid buffer (conv2's padding=1 width halo) stays in VMEM.
    zcol = jnp.zeros((th + 2, 1, cmid_p), jnp.float32)
    mid_ref[...] = jnp.concatenate([zcol, mid, zcol], axis=1)

    @pl.when(t == 0)
    def _():                                  # top image boundary row -> 0
        mid_ref[0, :, :] = jnp.zeros((w + 2, cmid_p), jnp.float32)

    @pl.when(t == num_t - 1)
    def _():                                  # bottom image boundary row -> 0
        mid_ref[th + 1, :, :] = jnp.zeros((w + 2, cmid_p), jnp.float32)

    # ---------------- stage 2: conv2 -> BN2 -> ReLU ----------------
    for dx in range(3):
        col = mid_ref[:, dx:dx + w, :]        # (th+2, W, Cmid_p)
        patch = jnp.concatenate(
            [col[0:th], col[1:th + 1], col[2:th + 2]], axis=-1)
        patch = patch.reshape(th * w, 3 * cmid_p).astype(mxu_dtype)
        prod = jnp.dot(patch, w2_ref[dx], preferred_element_type=jnp.float32)
        if dx == 0:
            acc2_ref[...] = prod
        else:
            acc2_ref[...] += prod
    out = jnp.maximum(acc2_ref[...] + b2_ref[...], 0.0)
    o_ref[...] = out.reshape(1, th, w, cout_p).astype(o_ref.dtype)


def _fold_bn(gamma, beta, mean, var, eps=1e-5):
    scale = gamma / jnp.sqrt(var + eps)
    bias = beta - mean * scale
    return scale, bias


def _prep_weight(w_hwio, scale, cin_p, cout_p, dtype):
    """Fold BN scale into the conv weight, pad channels to lane-dense 128
    multiples and fold the dy taps into K:
    result[dx, dy*cin_p + ci, co] = w[dy, dx, ci, co] * scale[co]."""
    kh, kw, cin, cout = w_hwio.shape
    w = w_hwio * scale[None, None, None, :]
    w = jnp.pad(w, ((0, 0), (0, 0), (0, cin_p - cin), (0, cout_p - cout)))
    w = jnp.transpose(w, (1, 0, 2, 3)).reshape(kw, kh * cin_p, cout_p)
    return w.astype(dtype)


def _prep_bias(bias, cout_p):
    c = bias.shape[0]
    return jnp.pad(bias, (0, cout_p - c)).reshape(1, cout_p).astype(jnp.float32)


def double_conv(x_nchw, params, *, tile_h=8, compute_dtype=jnp.bfloat16):
    """Equivalent of DoubleConv.forward (eval mode) on an NCHW input.

    tile_h: output rows per grid step.  Size it against the per-generation
    VMEM budget for large images (v7x has 64 MiB physical vs 128 MiB on
    v5e/v6e); the working set per step is roughly
      2*(tile_h, W, Cout_p) out + (tile_h+2, W+2, Cmid_p) mid + accumulators
      + the whole padded input image + both weight slabs.
    The toy shapes here use only a few MiB, well under the default scoped
    VMEM limit, so vmem_limit_bytes is left at its default.
    """
    N, cin, H, W = x_nchw.shape
    w1, w2 = params["w1"], params["w2"]
    cmid = w1.shape[-1]
    cout = w2.shape[-1]
    out_dtype = x_nchw.dtype

    cin_p = _round_up(cin, _LANES)
    cmid_p = _round_up(cmid, _LANES)
    cout_p = _round_up(cout, _LANES)

    th = _largest_divisor_leq(H, tile_h)
    num_t = H // th

    s1, b1 = _fold_bn(params["bn1"]["gamma"], params["bn1"]["beta"],
                      params["bn1"]["mean"], params["bn1"]["var"])
    s2, b2 = _fold_bn(params["bn2"]["gamma"], params["bn2"]["beta"],
                      params["bn2"]["mean"], params["bn2"]["var"])
    w1k = _prep_weight(w1, s1, cin_p, cmid_p, compute_dtype)
    w2k = _prep_weight(w2, s2, cmid_p, cout_p, compute_dtype)
    b1k = _prep_bias(b1, cmid_p)
    b2k = _prep_bias(b2, cout_p)

    # NCHW -> NHWC, channels padded to a lane-dense multiple of 128, spatial
    # halo of (2 rows, 1 col) of zeros.  This fuses with the mandatory
    # relayout/transpose into a single XLA copy (no separate pad round-trip).
    x = jnp.transpose(x_nchw, (0, 2, 3, 1))
    x = jnp.pad(x, ((0, 0), (2, 2), (1, 1), (0, cin_p - cin)))
    x = x.astype(compute_dtype)

    kernel = functools.partial(_double_conv_kernel, tile_h=th, width=W)

    flops = 2 * N * num_t * ((th + 2) * W * 3 * cin_p * cmid_p
                             + th * W * 3 * cmid_p * cout_p)
    bytes_accessed = int(x.size) * x.dtype.itemsize \
        + int(w1k.size) * w1k.dtype.itemsize \
        + int(w2k.size) * w2k.dtype.itemsize \
        + N * H * W * cout_p * jnp.dtype(out_dtype).itemsize

    out = pl.pallas_call(
        kernel,
        out_shape=jax.ShapeDtypeStruct((N, H, W, cout_p), out_dtype),
        grid_spec=pltpu.PrefetchScalarGridSpec(
            num_scalar_prefetch=0,
            grid=(N, num_t),
            in_specs=[
                # Whole padded image per batch element; block index is
                # constant in t, so the pipeline fetches it once per n.
                pl.BlockSpec((1, H + 4, W + 2, cin_p),
                             lambda n, t: (n, 0, 0, 0)),
                pl.BlockSpec((3, 3 * cin_p, cmid_p), lambda n, t: (0, 0, 0)),
                pl.BlockSpec((1, cmid_p), lambda n, t: (0, 0)),
                pl.BlockSpec((3, 3 * cmid_p, cout_p), lambda n, t: (0, 0, 0)),
                pl.BlockSpec((1, cout_p), lambda n, t: (0, 0)),
            ],
            out_specs=pl.BlockSpec((1, th, W, cout_p),
                                   lambda n, t: (n, t, 0, 0)),
            scratch_shapes=[
                pltpu.VMEM((th + 2, W + 2, cmid_p), jnp.float32),
                pltpu.VMEM(((th + 2) * W, cmid_p), jnp.float32),
                pltpu.VMEM((th * W, cout_p), jnp.float32),
            ],
        ),
        compiler_params=pltpu.CompilerParams(
            dimension_semantics=("parallel", "parallel")),
        cost_estimate=pl.CostEstimate(flops=flops, transcendentals=0,
                                      bytes_accessed=bytes_accessed),
    )(x, w1k, b1k, w2k, b2k)

    out = out[..., :cout]                 # drop lane padding
    return jnp.transpose(out, (0, 3, 1, 2))   # NHWC -> NCHW


def init_double_conv_params(key, in_channels, out_channels, mid_channels=None):
    if not mid_channels:
        mid_channels = out_channels
    k1, k2, k3, k4 = jax.random.split(key, 4)
    w1 = jax.random.normal(k1, (3, 3, in_channels, mid_channels), jnp.float32) * 0.1
    w2 = jax.random.normal(k2, (3, 3, mid_channels, out_channels), jnp.float32) * 0.1
    bn1 = dict(
        gamma=1.0 + 0.1 * jax.random.normal(k3, (mid_channels,), jnp.float32),
        beta=0.05 * jnp.arange(mid_channels, dtype=jnp.float32),
        mean=0.01 * jnp.arange(mid_channels, dtype=jnp.float32),
        var=jnp.ones((mid_channels,), jnp.float32),
    )
    bn2 = dict(
        gamma=1.0 + 0.1 * jax.random.normal(k4, (out_channels,), jnp.float32),
        beta=0.05 * jnp.arange(out_channels, dtype=jnp.float32),
        mean=0.01 * jnp.arange(out_channels, dtype=jnp.float32),
        var=jnp.ones((out_channels,), jnp.float32),
    )
    return dict(w1=w1, bn1=bn1, w2=w2, bn2=bn2)


def _reference(x_nchw, params, compute_dtype=jnp.float32, eps=1e-5):
    """Pure-JAX reference (lax.conv) with the same rounding points as the
    kernel: MXU operands (input / folded weights / mid activation) rounded to
    compute_dtype, accumulation + bias + ReLU in f32."""
    def block(x, w_hwio, bn):
        scale = bn["gamma"] / jnp.sqrt(bn["var"] + eps)
        bias = bn["beta"] - bn["mean"] * scale
        w_eff = (w_hwio * scale[None, None, None, :]).astype(compute_dtype)
        y = jax.lax.conv_general_dilated(
            x.astype(compute_dtype).astype(jnp.float32),
            w_eff.astype(jnp.float32),
            window_strides=(1, 1), padding="SAME",
            dimension_numbers=("NCHW", "HWIO", "NCHW"))
        y = y + bias[None, :, None, None]
        return jnp.maximum(y, 0.0)

    y = block(x_nchw, params["w1"], params["bn1"])
    return block(y, params["w2"], params["bn2"])


if __name__ == "__main__":
    key = jax.random.PRNGKey(0)
    kx, kp = jax.random.split(key)

    N, C_in, H, W = 2, 4, 16, 16
    C_out = 8
    x = jax.random.normal(kx, (N, C_in, H, W), jnp.float32)
    params = init_double_conv_params(kp, C_in, C_out)

    # Default bf16-MXU path.  tile_h=8 -> grid (2, 2): exercises both the
    # boundary and interior row tiles (halo recompute + boundary zeroing).
    run_bf16 = jax.jit(functools.partial(double_conv, tile_h=8,
                                         compute_dtype=jnp.bfloat16))
    out_bf16 = jax.block_until_ready(run_bf16(x, params))
    assert out_bf16.shape == (N, C_out, H, W), out_bf16.shape
    ref_bf16 = _reference(x, params, jnp.bfloat16)
    assert jnp.allclose(out_bf16, ref_bf16, atol=5e-3, rtol=5e-3), \
        "bf16 kernel mismatch vs reference"

    # f32 path, tight check.
    run_f32 = jax.jit(functools.partial(double_conv, tile_h=8,
                                        compute_dtype=jnp.float32))
    out_f32 = jax.block_until_ready(run_f32(x, params))
    ref_f32 = _reference(x, params, jnp.float32)
    assert jnp.allclose(out_f32, ref_f32, atol=1e-3, rtol=1e-3), \
        "f32 kernel mismatch vs reference"

    print("KERNEL_OK")
</pallas_src>

<mosaic_0001>
module attributes {stable_mosaic.version = 11 : i64} {
  func.func @_double_conv_kernel(%arg0: i32, %arg1: i32, %arg2: memref<1x20x18x128xbf16, #tpu.memory_space<vmem>>, %arg3: memref<3x384x128xbf16, #tpu.memory_space<vmem>>, %arg4: memref<1x128xf32, #tpu.memory_space<vmem>>, %arg5: memref<3x384x128xbf16, #tpu.memory_space<vmem>>, %arg6: memref<1x128xf32, #tpu.memory_space<vmem>>, %arg7: memref<1x8x16x128xf32, #tpu.memory_space<vmem>>, %arg8: memref<10x18x128xf32, #tpu.memory_space<vmem>>, %arg9: memref<160x128xf32, #tpu.memory_space<vmem>>, %arg10: memref<128x128xf32, #tpu.memory_space<vmem>>) attributes {dimension_semantics = [#tpu.dimension_semantics<parallel>, #tpu.dimension_semantics<parallel>], iteration_bounds = array<i64: 2, 2>, scalar_prefetch = 0 : i64, scratch_operands = 3 : i64, tpu.core_type = #tpu.core_type<tc>, window_params = [{transform_indices = @transform_0, window_bounds = array<i64: 1, 20, 18, 128>}, {pipeline_mode = #tpu.pipeline_mode<synchronous>, transform_indices = @transform_1, window_bounds = array<i64: 3, 384, 128>}, {pipeline_mode = #tpu.pipeline_mode<synchronous>, transform_indices = @transform_2, window_bounds = array<i64: 1, 128>}, {pipeline_mode = #tpu.pipeline_mode<synchronous>, transform_indices = @transform_3, window_bounds = array<i64: 3, 384, 128>}, {pipeline_mode = #tpu.pipeline_mode<synchronous>, transform_indices = @transform_4, window_bounds = array<i64: 1, 128>}, {transform_indices = @transform_5, window_bounds = array<i64: 1, 8, 16, 128>}]} {
    %c8_i32 = arith.constant 8 : i32
    %0 = arith.muli %arg1, %c8_i32 : i32
    %1 = tpu.assume_multiple %0, 8 : i32
    %c0 = arith.constant 0 : index
    %2 = arith.index_cast %1 : i32 to index
    %c0_0 = arith.constant 0 : index
    %c0_1 = arith.constant 0 : index
    %3 = vector.load %arg2[%c0, %2, %c0_0, %c0_1] : memref<1x20x18x128xbf16, #tpu.memory_space<vmem>>, vector<1x12x18x128xbf16>
    %4 = vector.shape_cast %3 : vector<1x12x18x128xbf16> to vector<12x18x128xbf16>
    %5 = arith.extf %4 : vector<12x18x128xbf16> to vector<12x18x128xf32>
    %6 = vector.extract_strided_slice %5 {offsets = [0, 0, 0], sizes = [12, 16, 128], strides = [1, 1, 1]} : vector<12x18x128xf32> to vector<12x16x128xf32>
    %7 = vector.extract_strided_slice %6 {offsets = [0, 0, 0], sizes = [10, 16, 128], strides = [1, 1, 1]} : vector<12x16x128xf32> to vector<10x16x128xf32>
    %8 = vector.extract_strided_slice %6 {offsets = [1, 0, 0], sizes = [10, 16, 128], strides = [1, 1, 1]} : vector<12x16x128xf32> to vector<10x16x128xf32>
    %9 = vector.extract_strided_slice %6 {offsets = [2, 0, 0], sizes = [10, 16, 128], strides = [1, 1, 1]} : vector<12x16x128xf32> to vector<10x16x128xf32>
    %10 = tpu.concatenate %7, %8, %9 in 2 : vector<10x16x128xf32>, vector<10x16x128xf32>, vector<10x16x128xf32> -> vector<10x16x384xf32>
    %11 = vector.shape_cast %10 : vector<10x16x384xf32> to vector<160x384xf32>
    %12 = arith.truncf %11 : vector<160x384xf32> to vector<160x384xbf16>
    %c0_2 = arith.constant 0 : index
    %c0_3 = arith.constant 0 : index
    %c0_4 = arith.constant 0 : index
    %13 = vector.load %arg3[%c0_2, %c0_3, %c0_4] : memref<3x384x128xbf16, #tpu.memory_space<vmem>>, vector<1x384x128xbf16>
    %14 = vector.shape_cast %13 : vector<1x384x128xbf16> to vector<384x128xbf16>
    %cst = arith.constant dense<0.000000e+00> : vector<160x128xf32>
    %15 = tpu.matmul %12, %14, %cst {dimension_numbers = #tpu.dot_dimension_numbers<[1], [0], [0], [1], [0, 0, 1, 1], [], []>} : vector<160x384xbf16>, vector<384x128xbf16>, vector<160x128xf32> -> vector<160x128xf32>
    %c0_5 = arith.constant 0 : index
    %c0_6 = arith.constant 0 : index
    %16 = vector.load %arg9[%c0_5, %c0_6] : memref<160x128xf32, #tpu.memory_space<vmem>>, vector<160x128xf32>
    tpu.vector_store %arg9[%c0_5, %c0_6], %15 {strides = array<i32>} : memref<160x128xf32, #tpu.memory_space<vmem>>, vector<160x128xf32>,
    %17 = vector.extract_strided_slice %5 {offsets = [0, 1, 0], sizes = [12, 16, 128], strides = [1, 1, 1]} : vector<12x18x128xf32> to vector<12x16x128xf32>
    %18 = vector.extract_strided_slice %17 {offsets = [0, 0, 0], sizes = [10, 16, 128], strides = [1, 1, 1]} : vector<12x16x128xf32> to vector<10x16x128xf32>
    %19 = vector.extract_strided_slice %17 {offsets = [1, 0, 0], sizes = [10, 16, 128], strides = [1, 1, 1]} : vector<12x16x128xf32> to vector<10x16x128xf32>
    %20 = vector.extract_strided_slice %17 {offsets = [2, 0, 0], sizes = [10, 16, 128], strides = [1, 1, 1]} : vector<12x16x128xf32> to vector<10x16x128xf32>
    %21 = tpu.concatenate %18, %19, %20 in 2 : vector<10x16x128xf32>, vector<10x16x128xf32>, vector<10x16x128xf32> -> vector<10x16x384xf32>
    %22 = vector.shape_cast %21 : vector<10x16x384xf32> to vector<160x384xf32>
    %23 = arith.truncf %22 : vector<160x384xf32> to vector<160x384xbf16>
    %c1 = arith.constant 1 : index
    %c0_7 = arith.constant 0 : index
    %c0_8 = arith.constant 0 : index
    %24 = vector.load %arg3[%c1, %c0_7, %c0_8] : memref<3x384x128xbf16, #tpu.memory_space<vmem>>, vector<1x384x128xbf16>
    %25 = vector.shape_cast %24 : vector<1x384x128xbf16> to vector<384x128xbf16>
    %cst_9 = arith.constant dense<0.000000e+00> : vector<160x128xf32>
    %26 = tpu.matmul %23, %25, %cst_9 {dimension_numbers = #tpu.dot_dimension_numbers<[1], [0], [0], [1], [0, 0, 1, 1], [], []>} : vector<160x384xbf16>, vector<384x128xbf16>, vector<160x128xf32> -> vector<160x128xf32>
    %c0_10 = arith.constant 0 : index
    %c0_11 = arith.constant 0 : index
    %27 = vector.load %arg9[%c0_10, %c0_11] : memref<160x128xf32, #tpu.memory_space<vmem>>, vector<160x128xf32>
    %28 = arith.addf %27, %26 : vector<160x128xf32>
    %c0_12 = arith.constant 0 : index
    %c0_13 = arith.constant 0 : index
    %29 = vector.load %arg9[%c0_12, %c0_13] : memref<160x128xf32, #tpu.memory_space<vmem>>, vector<160x128xf32>
    tpu.vector_store %arg9[%c0_12, %c0_13], %28 {strides = array<i32>} : memref<160x128xf32, #tpu.memory_space<vmem>>, vector<160x128xf32>,
    %30 = vector.extract_strided_slice %5 {offsets = [0, 2, 0], sizes = [12, 16, 128], strides = [1, 1, 1]} : vector<12x18x128xf32> to vector<12x16x128xf32>
    %31 = vector.extract_strided_slice %30 {offsets = [0, 0, 0], sizes = [10, 16, 128], strides = [1, 1, 1]} : vector<12x16x128xf32> to vector<10x16x128xf32>
    %32 = vector.extract_strided_slice %30 {offsets = [1, 0, 0], sizes = [10, 16, 128], strides = [1, 1, 1]} : vector<12x16x128xf32> to vector<10x16x128xf32>
    %33 = vector.extract_strided_slice %30 {offsets = [2, 0, 0], sizes = [10, 16, 128], strides = [1, 1, 1]} : vector<12x16x128xf32> to vector<10x16x128xf32>
    %34 = tpu.concatenate %31, %32, %33 in 2 : vector<10x16x128xf32>, vector<10x16x128xf32>, vector<10x16x128xf32> -> vector<10x16x384xf32>
    %35 = vector.shape_cast %34 : vector<10x16x384xf32> to vector<160x384xf32>
    %36 = arith.truncf %35 : vector<160x384xf32> to vector<160x384xbf16>
    %c2 = arith.constant 2 : index
    %c0_14 = arith.constant 0 : index
    %c0_15 = arith.constant 0 : index
    %37 = vector.load %arg3[%c2, %c0_14, %c0_15] : memref<3x384x128xbf16, #tpu.memory_space<vmem>>, vector<1x384x128xbf16>
    %38 = vector.shape_cast %37 : vector<1x384x128xbf16> to vector<384x128xbf16>
    %cst_16 = arith.constant dense<0.000000e+00> : vector<160x128xf32>
    %39 = tpu.matmul %36, %38, %cst_16 {dimension_numbers = #tpu.dot_dimension_numbers<[1], [0], [0], [1], [0, 0, 1, 1], [], []>} : vector<160x384xbf16>, vector<384x128xbf16>, vector<160x128xf32> -> vector<160x128xf32>
    %c0_17 = arith.constant 0 : index
    %c0_18 = arith.constant 0 : index
    %40 = vector.load %arg9[%c0_17, %c0_18] : memref<160x128xf32, #tpu.memory_space<vmem>>, vector<160x128xf32>
    %41 = arith.addf %40, %39 : vector<160x128xf32>
    %c0_19 = arith.constant 0 : index
    %c0_20 = arith.constant 0 : index
    %42 = vector.load %arg9[%c0_19, %c0_20] : memref<160x128xf32, #tpu.memory_space<vmem>>, vector<160x128xf32>
    tpu.vector_store %arg9[%c0_19, %c0_20], %41 {strides = array<i32>} : memref<160x128xf32, #tpu.memory_space<vmem>>, vector<160x128xf32>,
    %c0_21 = arith.constant 0 : index
    %c0_22 = arith.constant 0 : index
    %43 = vector.load %arg9[%c0_21, %c0_22] : memref<160x128xf32, #tpu.memory_space<vmem>>, vector<160x128xf32>
    %c0_23 = arith.constant 0 : index
    %c0_24 = arith.constant 0 : index
    %44 = vector.load %arg4[%c0_23, %c0_24] : memref<1x128xf32, #tpu.memory_space<vmem>>, vector<1x128xf32>
    %45 = vector.broadcast %44 : vector<1x128xf32> to vector<160x128xf32>
    %46 = arith.addf %43, %45 : vector<160x128xf32>
    %cst_25 = arith.constant 0.000000e+00 : f32
    %47 = vector.broadcast %cst_25 : f32 to vector<160x128xf32>
    %48 = arith.maximumf %46, %47 : vector<160x128xf32>
    %49 = vector.shape_cast %48 : vector<160x128xf32> to vector<10x16x128xf32>
    %cst_26 = arith.constant 0.000000e+00 : f32
    %50 = vector.broadcast %cst_26 : f32 to vector<10x1x128xf32>
    %51 = tpu.concatenate %50, %49, %50 in 1 : vector<10x1x128xf32>, vector<10x16x128xf32>, vector<10x1x128xf32> -> vector<10x18x128xf32>
    %c0_27 = arith.constant 0 : index
    %c0_28 = arith.constant 0 : index
    %c0_29 = arith.constant 0 : index
    %52 = vector.load %arg8[%c0_27, %c0_28, %c0_29] : memref<10x18x128xf32, #tpu.memory_space<vmem>>, vector<10x18x128xf32>
    tpu.vector_store %arg8[%c0_27, %c0_28, %c0_29], %51 {strides = array<i32>} : memref<10x18x128xf32, #tpu.memory_space<vmem>>, vector<10x18x128xf32>,
    %c0_i32 = arith.constant 0 : i32
    %53 = arith.cmpi eq, %arg1, %c0_i32 : i32
    %54 = arith.extui %53 : i1 to i32
    %c0_i32_30 = arith.constant 0 : i32
    %55 = arith.cmpi ne, %54, %c0_i32_30 : i32
    scf.if %55 {
      %cst_72 = arith.constant 0.000000e+00 : f32
      %104 = vector.broadcast %cst_72 : f32 to vector<18x128xf32>
      %c0_73 = arith.constant 0 : index
      %c0_74 = arith.constant 0 : index
      %c0_75 = arith.constant 0 : index
      %105 = vector.load %arg8[%c0_73, %c0_74, %c0_75] : memref<10x18x128xf32, #tpu.memory_space<vmem>>, vector<1x18x128xf32>
      %106 = vector.shape_cast %105 : vector<1x18x128xf32> to vector<18x128xf32>
      %107 = vector.shape_cast %104 : vector<18x128xf32> to vector<1x18x128xf32>
      tpu.vector_store %arg8[%c0_73, %c0_74, %c0_75], %107 {strides = array<i32>} : memref<10x18x128xf32, #tpu.memory_space<vmem>>, vector<1x18x128xf32>,
    } else {
    }
    %c1_i32 = arith.constant 1 : i32
    %56 = arith.cmpi eq, %arg1, %c1_i32 : i32
    %57 = arith.extui %56 : i1 to i32
    %c0_i32_31 = arith.constant 0 : i32
    %58 = arith.cmpi ne, %57, %c0_i32_31 : i32
    scf.if %58 {
      %cst_72 = arith.constant 0.000000e+00 : f32
      %104 = vector.broadcast %cst_72 : f32 to vector<18x128xf32>
      %c9 = arith.constant 9 : index
      %c0_73 = arith.constant 0 : index
      %c0_74 = arith.constant 0 : index
      %105 = vector.load %arg8[%c9, %c0_73, %c0_74] : memref<10x18x128xf32, #tpu.memory_space<vmem>>, vector<1x18x128xf32>
      %106 = vector.shape_cast %105 : vector<1x18x128xf32> to vector<18x128xf32>
      %107 = vector.shape_cast %104 : vector<18x128xf32> to vector<1x18x128xf32>
      tpu.vector_store %arg8[%c9, %c0_73, %c0_74], %107 {strides = array<i32>} : memref<10x18x128xf32, #tpu.memory_space<vmem>>, vector<1x18x128xf32>,
    } else {
    }
    %c0_32 = arith.constant 0 : index
    %c0_33 = arith.constant 0 : index
    %c0_34 = arith.constant 0 : index
    %59 = vector.load %arg8[%c0_32, %c0_33, %c0_34] : memref<10x18x128xf32, #tpu.memory_space<vmem>>, vector<10x16x128xf32>
    %60 = vector.extract_strided_slice %59 {offsets = [0, 0, 0], sizes = [8, 16, 128], strides = [1, 1, 1]} : vector<10x16x128xf32> to vector<8x16x128xf32>
    %61 = vector.extract_strided_slice %59 {offsets = [1, 0, 0], sizes = [8, 16, 128], strides = [1, 1, 1]} : vector<10x16x128xf32> to vector<8x16x128xf32>
    %62 = vector.extract_strided_slice %59 {offsets = [2, 0, 0], sizes = [8, 16, 128], strides = [1, 1, 1]} : vector<10x16x128xf32> to vector<8x16x128xf32>
    %63 = tpu.concatenate %60, %61, %62 in 2 : vector<8x16x128xf32>, vector<8x16x128xf32>, vector<8x16x128xf32> -> vector<8x16x384xf32>
    %64 = vector.shape_cast %63 : vector<8x16x384xf32> to vector<128x384xf32>
    %65 = arith.truncf %64 : vector<128x384xf32> to vector<128x384xbf16>
    %c0_35 = arith.constant 0 : index
    %c0_36 = arith.constant 0 : index
    %c0_37 = arith.constant 0 : index
    %66 = vector.load %arg5[%c0_35, %c0_36, %c0_37] : memref<3x384x128xbf16, #tpu.memory_space<vmem>>, vector<1x384x128xbf16>
    %67 = vector.shape_cast %66 : vector<1x384x128xbf16> to vector<384x128xbf16>
    %cst_38 = arith.constant dense<0.000000e+00> : vector<128x128xf32>
    %68 = tpu.matmul %65, %67, %cst_38 {dimension_numbers = #tpu.dot_dimension_numbers<[1], [0], [0], [1], [0, 0, 1, 1], [], []>} : vector<128x384xbf16>, vector<384x128xbf16>, vector<128x128xf32> -> vector<128x128xf32>
    %c0_39 = arith.constant 0 : index
    %c0_40 = arith.constant 0 : index
    %69 = vector.load %arg10[%c0_39, %c0_40] : memref<128x128xf32, #tpu.memory_space<vmem>>, vector<128x128xf32>
    tpu.vector_store %arg10[%c0_39, %c0_40], %68 {strides = array<i32>} : memref<128x128xf32, #tpu.memory_space<vmem>>, vector<128x128xf32>,
    %c0_41 = arith.constant 0 : index
    %c1_42 = arith.constant 1 : index
    %c0_43 = arith.constant 0 : index
    %70 = vector.load %arg8[%c0_41, %c1_42, %c0_43] : memref<10x18x128xf32, #tpu.memory_space<vmem>>, vector<10x16x128xf32>
    %71 = vector.extract_strided_slice %70 {offsets = [0, 0, 0], sizes = [8, 16, 128], strides = [1, 1, 1]} : vector<10x16x128xf32> to vector<8x16x128xf32>
    %72 = vector.extract_strided_slice %70 {offsets = [1, 0, 0], sizes = [8, 16, 128], strides = [1, 1, 1]} : vector<10x16x128xf32> to vector<8x16x128xf32>
    %73 = vector.extract_strided_slice %70 {offsets = [2, 0, 0], sizes = [8, 16, 128], strides = [1, 1, 1]} : vector<10x16x128xf32> to vector<8x16x128xf32>
    %74 = tpu.concatenate %71, %72, %73 in 2 : vector<8x16x128xf32>, vector<8x16x128xf32>, vector<8x16x128xf32> -> vector<8x16x384xf32>
    %75 = vector.shape_cast %74 : vector<8x16x384xf32> to vector<128x384xf32>
    %76 = arith.truncf %75 : vector<128x384xf32> to vector<128x384xbf16>
    %c1_44 = arith.constant 1 : index
    %c0_45 = arith.constant 0 : index
    %c0_46 = arith.constant 0 : index
    %77 = vector.load %arg5[%c1_44, %c0_45, %c0_46] : memref<3x384x128xbf16, #tpu.memory_space<vmem>>, vector<1x384x128xbf16>
    %78 = vector.shape_cast %77 : vector<1x384x128xbf16> to vector<384x128xbf16>
    %cst_47 = arith.constant dense<0.000000e+00> : vector<128x128xf32>
    %79 = tpu.matmul %76, %78, %cst_47 {dimension_numbers = #tpu.dot_dimension_numbers<[1], [0], [0], [1], [0, 0, 1, 1], [], []>} : vector<128x384xbf16>, vector<384x128xbf16>, vector<128x128xf32> -> vector<128x128xf32>
    %c0_48 = arith.constant 0 : index
    %c0_49 = arith.constant 0 : index
    %80 = vector.load %arg10[%c0_48, %c0_49] : memref<128x128xf32, #tpu.memory_space<vmem>>, vector<128x128xf32>
    %81 = arith.addf %80, %79 : vector<128x128xf32>
    %c0_50 = arith.constant 0 : index
    %c0_51 = arith.constant 0 : index
    %82 = vector.load %arg10[%c0_50, %c0_51] : memref<128x128xf32, #tpu.memory_space<vmem>>, vector<128x128xf32>
    tpu.vector_store %arg10[%c0_50, %c0_51], %81 {strides = array<i32>} : memref<128x128xf32, #tpu.memory_space<vmem>>, vector<128x128xf32>,
    %c0_52 = arith.constant 0 : index
    %c2_53 = arith.constant 2 : index
    %c0_54 = arith.constant 0 : index
    %83 = vector.load %arg8[%c0_52, %c2_53, %c0_54] : memref<10x18x128xf32, #tpu.memory_space<vmem>>, vector<10x16x128xf32>
    %84 = vector.extract_strided_slice %83 {offsets = [0, 0, 0], sizes = [8, 16, 128], strides = [1, 1, 1]} : vector<10x16x128xf32> to vector<8x16x128xf32>
    %85 = vector.extract_strided_slice %83 {offsets = [1, 0, 0], sizes = [8, 16, 128], strides = [1, 1, 1]} : vector<10x16x128xf32> to vector<8x16x128xf32>
    %86 = vector.extract_strided_slice %83 {offsets = [2, 0, 0], sizes = [8, 16, 128], strides = [1, 1, 1]} : vector<10x16x128xf32> to vector<8x16x128xf32>
    %87 = tpu.concatenate %84, %85, %86 in 2 : vector<8x16x128xf32>, vector<8x16x128xf32>, vector<8x16x128xf32> -> vector<8x16x384xf32>
    %88 = vector.shape_cast %87 : vector<8x16x384xf32> to vector<128x384xf32>
    %89 = arith.truncf %88 : vector<128x384xf32> to vector<128x384xbf16>
    %c2_55 = arith.constant 2 : index
    %c0_56 = arith.constant 0 : index
    %c0_57 = arith.constant 0 : index
    %90 = vector.load %arg5[%c2_55, %c0_56, %c0_57] : memref<3x384x128xbf16, #tpu.memory_space<vmem>>, vector<1x384x128xbf16>
    %91 = vector.shape_cast %90 : vector<1x384x128xbf16> to vector<384x128xbf16>
    %cst_58 = arith.constant dense<0.000000e+00> : vector<128x128xf32>
    %92 = tpu.matmul %89, %91, %cst_58 {dimension_numbers = #tpu.dot_dimension_numbers<[1], [0], [0], [1], [0, 0, 1, 1], [], []>} : vector<128x384xbf16>, vector<384x128xbf16>, vector<128x128xf32> -> vector<128x128xf32>
    %c0_59 = arith.constant 0 : index
    %c0_60 = arith.constant 0 : index
    %93 = vector.load %arg10[%c0_59, %c0_60] : memref<128x128xf32, #tpu.memory_space<vmem>>, vector<128x128xf32>
    %94 = arith.addf %93, %92 : vector<128x128xf32>
    %c0_61 = arith.constant 0 : index
    %c0_62 = arith.constant 0 : index
    %95 = vector.load %arg10[%c0_61, %c0_62] : memref<128x128xf32, #tpu.memory_space<vmem>>, vector<128x128xf32>
    tpu.vector_store %arg10[%c0_61, %c0_62], %94 {strides = array<i32>} : memref<128x128xf32, #tpu.memory_space<vmem>>, vector<128x128xf32>,
    %c0_63 = arith.constant 0 : index
    %c0_64 = arith.constant 0 : index
    %96 = vector.load %arg10[%c0_63, %c0_64] : memref<128x128xf32, #tpu.memory_space<vmem>>, vector<128x128xf32>
    %c0_65 = arith.constant 0 : index
    %c0_66 = arith.constant 0 : index
    %97 = vector.load %arg6[%c0_65, %c0_66] : memref<1x128xf32, #tpu.memory_space<vmem>>, vector<1x128xf32>
    %98 = vector.broadcast %97 : vector<1x128xf32> to vector<128x128xf32>
    %99 = arith.addf %96, %98 : vector<128x128xf32>
    %cst_67 = arith.constant 0.000000e+00 : f32
    %100 = vector.broadcast %cst_67 : f32 to vector<128x128xf32>
    %101 = arith.maximumf %99, %100 : vector<128x128xf32>
    %102 = vector.shape_cast %101 : vector<128x128xf32> to vector<1x8x16x128xf32>
    %c0_68 = arith.constant 0 : index
    %c0_69 = arith.constant 0 : index
    %c0_70 = arith.constant 0 : index
    %c0_71 = arith.constant 0 : index
    %103 = vector.load %arg7[%c0_68, %c0_69, %c0_70, %c0_71] : memref<1x8x16x128xf32, #tpu.memory_space<vmem>>, vector<1x8x16x128xf32>
    tpu.vector_store %arg7[%c0_68, %c0_69, %c0_70, %c0_71], %102 {strides = array<i32>} : memref<1x8x16x128xf32, #tpu.memory_space<vmem>>, vector<1x8x16x128xf32>,
    return
  }
  func.func @transform_0(%arg0: i32, %arg1: i32) -> (i32, i32, i32, i32) {
    %c0_i32 = arith.constant 0 : i32
    %c0_i32_0 = arith.constant 0 : i32
    %c0_i32_1 = arith.constant 0 : i32
    %c0_i32_2 = arith.constant 0 : i32
    return %arg0, %c0_i32, %c0_i32_0, %c0_i32_1 : i32, i32, i32, i32
  }
  func.func @transform_1(%arg0: i32, %arg1: i32) -> (i32, i32, i32) {
    %c0_i32 = arith.constant 0 : i32
    %c0_i32_0 = arith.constant 0 : i32
    %c0_i32_1 = arith.constant 0 : i32
    %c0_i32_2 = arith.constant 0 : i32
    return %c0_i32, %c0_i32_0, %c0_i32_1 : i32, i32, i32
  }
  func.func @transform_2(%arg0: i32, %arg1: i32) -> (i32, i32) {
    %c0_i32 = arith.constant 0 : i32
    %c0_i32_0 = arith.constant 0 : i32
    %c0_i32_1 = arith.constant 0 : i32
    return %c0_i32, %c0_i32_0 : i32, i32
  }
  func.func @transform_3(%arg0: i32, %arg1: i32) -> (i32, i32, i32) {
    %c0_i32 = arith.constant 0 : i32
    %c0_i32_0 = arith.constant 0 : i32
    %c0_i32_1 = arith.constant 0 : i32
    %c0_i32_2 = arith.constant 0 : i32
    return %c0_i32, %c0_i32_0, %c0_i32_1 : i32, i32, i32
  }
  func.func @transform_4(%arg0: i32, %arg1: i32) -> (i32, i32) {
    %c0_i32 = arith.constant 0 : i32
    %c0_i32_0 = arith.constant 0 : i32
    %c0_i32_1 = arith.constant 0 : i32
    return %c0_i32, %c0_i32_0 : i32, i32
  }
  func.func @transform_5(%arg0: i32, %arg1: i32) -> (i32, i32, i32, i32) {
    %c0_i32 = arith.constant 0 : i32
    %c0_i32_0 = arith.constant 0 : i32
    %c0_i32_1 = arith.constant 0 : i32
    return %arg0, %arg1, %c0_i32, %c0_i32_0 : i32, i32, i32, i32
  }
}

</mosaic_0001>

<bundles_post_ra>
// kernel: double_conv.1
= control target key start
LH: loop header
LB: loop body
LE: loop exit
PB: predicated region body
PF: predicated region fallthrough
CT: control target
= control target key end

     0   :  { %s4500_s18 = smov 0   ;;  %s4502_s19 = smov 0   ;;  %s5747_s0 = inlined_call_operand.vmem [shape: bf16[2,20,18,128], index: 0, kind: input, shape index: {}]   ;;  %s5748_s1 = inlined_call_operand.vmem [shape: bf16[3,384,128], index: 1, kind: input, shape index: {}]   ;;  %s5749_s2 = inlined_call_operand.vmem [shape: f32[1,128], index: 2, kind: input, shape index: {}]   ;;  %s5750_s3 = inlined_call_operand.vmem [shape: bf16[3,384,128], index: 3, kind: input, shape index: {}]   ;;  %s5751_s4 = inlined_call_operand.vmem [shape: f32[1,128], index: 4, kind: input, shape index: {}]   ;;  %s5752_s5 = inlined_call_operand.vmem [shape: f32[2,16,16,128], index: 5, kind: output, shape index: {}]  }
   0x1   :  { %s4504_s20 = smov 0   ;;  %s4506_s21 = smov 0  }
   0x2   :  { %s4508_s22 = smov 0  }
   0x3 LB: > { %s24_s23 = sadd.s32 1, %s4458_s20  ;;  %s27_s24 = sadd.s32 1, %s4462_s21  ;;  %s4466_s22 = sphi %s4508_s22, %s15_s22   ;;  %s4462_s21 = sphi %s4506_s21, %s5862_s21   ;;  %s4458_s20 = sphi %s4504_s20, %s5861_s20   ;;  %s4454_s19 = sphi %s4502_s19, %s5860_s19   ;;  %s4450_s18 = sphi %s4500_s18, %s5859_s18  }
   0x4   : > { %p25_p0 = scmp.ge.s32.totalorder %s24_s23, 2  ;;  %p3412_p1 = scmp.ge.s32.totalorder %s4466_s22, 1 }
   0x5   : > { %p201_p2 = scmp.lt.s32.totalorder %s4466_s22, 5 }
   0x6   : > { %s5864_s23 = smov (%p25_p0, %s24_s23), 0  ;;  %s5866_s24 = smov (!%p25_p0, %s27_s24), %s4462_s21 }
   0x7   : > { %p202_p3 = pnand %p3412_p1, %p201_p2  ;;  %p29_p4 = scmp.ge.s32.totalorder %s5866_s24, 2 }
   0x9   : > { %s5868_s24 = smov (%p29_p4, %s5866_s24), 0  ;;  %205 = sbr.rel (%p202_p3) target bundleno = 1270 (0x4f6), region = 40 }
   0xe   : > { %v4201_v0 = vld [vmem:[%s5748_s1 + $0x38] sm:$0xff]  ;;  %p234_p5 = scmp.lt.s32.totalorder %s4454_s19, 1  ;;  %s3414_s29 = sshll.u32 %s4450_s18, 3  ;;  %v4200_v2 = vld [vmem:[%s5748_s1 + $0x30] sm:$0xff]  ;;  %v4199_v5 = vld [vmem:[%s5748_s1 + $0x28] sm:$0xff]  ;;  %vm763_vm0 = vcmask 1046528  }
   0xf   : > { %v4209_v1 = vld [vmem:[%s5748_s1 + $0x78] sm:$0xff]  ;;  %p242_p6 = scmp.lt.s32.totalorder %s3414_s29, 15  ;;  %530 = vmatpush.bf16.msra.mxu0 %v4201_v0  ;;  %v4208_v3 = vld [vmem:[%s5748_s1 + $0x70] sm:$0xff]  ;;  %v4207_v6 = vld [vmem:[%s5748_s1 + $0x68] sm:$0xff]  ;;  %s4193_s13 = smul.u32 96, %s4450_s18  ;;  %vm1290_vm1 = vcmask 1045504  }
  0x10   : > { %589 = vmatpush.bf16.msra.mxu1 %v4209_v1  ;;  %s5870_s19 = smov (!%p234_p5, %s4454_s19), 1  ;;  %4367 = vmatpush.bf16.msra.mxu3 %v4209_v1  ;;  %v4217_v4 = vld [vmem:[%s5748_s1 + $0xb8] sm:$0xff]  ;;  %v4198_v7 = vld [vmem:[%s5748_s1 + $0x20] sm:$0xff]  ;;  %v4216_v11 = vld [vmem:[%s5748_s1 + $0xb0] sm:$0xff]  ;;  %vm1901_vm2 = vcmask 1040384   ;;  %p3805_p7 = scmp.ne.s32.totalorder %s4450_s18, 0 }
  0x11   : > { %s5872_s29 = smov (!%p242_p6, %s3414_s29), 15  ;;  %s3416_s9 = sshll.u32 %s5870_s19, 5  ;;  %4375 = vmatpush.bf16.msra.mxu2 %v4217_v4  ;;  %v4206_v8 = vld [vmem:[%s5748_s1 + $0x60] sm:$0xff]  ;;  %v4197_v9 = vld [vmem:[%s5748_s1 + $0x18] sm:$0xff]  ;;  %v4196_v12 = vld [vmem:[%s5748_s1 + $0x10] sm:$0xff] }
  0x12   : > { %s3415_s10 = sshll.u32 %s5872_s29, 1  ;;  %s4383_s8 = smul.u32 240, %s5870_s19  ;;  %v4205_v10 = vld [vmem:[%s5748_s1 + $0x58] sm:$0xff]  ;;  %v4204_v13 = vld [vmem:[%s5748_s1 + $0x50] sm:$0xff]  ;;  %v4215_v14 = vld [vmem:[%s5748_s1 + $0xa8] sm:$0xff] }
  0x13   : > { %531 = vmatpush.bf16.msra.mxu0 %v4200_v2  ;;  %s246_s17 = sadd.s32 %s3416_s9, %s3415_s10  ;;  %v4195_v15 = vld [vmem:[%s5748_s1 + $0x8] sm:$0xff]  ;;  %v4214_v18 = vld [vmem:[%s5748_s1 + $0xa0] sm:$0xff]  ;;  %v4213_v23 = vld [vmem:[%s5748_s1 + $0x98] sm:$0xff] }
  0x14   : > { %590 = vmatpush.bf16.msra.mxu1 %v4208_v3  ;;  %s3417_s25 = sshll.u32 %s246_s17, 3  ;;  %4368 = vmatpush.bf16.msra.mxu3 %v4208_v3  ;;  %s238_s16 = scalar_lea.vmem %s5747_s0, %s4383_s8  ;;  %v4203_v16 = vld [vmem:[%s5748_s1 + $0x48] sm:$0xff]  ;;  %v4194_v21 = vld [vmem:[%s5748_s1] sm:$0xff]  ;;  %v4212_v25 = vld [vmem:[%s5748_s1 + $0x90] sm:$0xff] }
  0x15   : > { %s4557_s28 = scalar_lea.vmem %s5752_s5, %s3417_s25  ;;  %s4584_s30 = scalar_lea.vmem %s238_s16, %s4193_s13  ;;  %4376 = vmatpush.bf16.msra.mxu2 %v4216_v11  ;;  %v4202_v22 = vld [vmem:[%s5748_s1 + $0x40] sm:$0xff]  ;;  %v4211_v26 = vld [vmem:[%s5748_s1 + $0x88] sm:$0xff]  ;;  %v4225_v48 = vld [vmem:[%s5748_s1 + $0xf8] sm:$0xff] }
  0x16   : > { %v4596_v17 = vld [vmem:[%s4584_s30 + $0xc] sm:$0xff]   ;;  %v4613_v24 = vld [vmem:[%s4584_s30] sm:$0xff]   ;;  %v4632_v31 = vld [vmem:[%s4584_s30 + $0x18] sm:$0xff]  }
  0x17   : > { %532 = vmatpush.bf16.msra.mxu0 %v4199_v5  ;;  %v5768_v19 = vunpack.c.l.bf16 %v4596_v17  ;;  %v5767_v20 = vunpack.c.h.bf16 %v4596_v17  ;;  %v4624_v27 = vld [vmem:[%s4584_s30 + $0x3c] sm:$0xff]   ;;  %v4638_v32 = vld [vmem:[%s4584_s30 + $0x24] sm:$0xff]   ;;  %v4649_v36 = vld [vmem:[%s4584_s30 + $0x54] sm:$0xff]   ;;  %v5769_v5 = vunpack.c.h.bf16 %v4613_v24 }
  0x18   : > { %591 = vmatpush.bf16.msra.mxu1 %v4207_v6  ;;  %4369 = vmatpush.bf16.msra.mxu3 %v4207_v6  ;;  %v5764_v28 = vunpack.c.l.bf16 %v4624_v27  ;;  %v5765_v29 = vunpack.c.h.bf16 %v4624_v27  ;;  %v4210_v30 = vld [vmem:[%s5748_s1 + $0x80] sm:$0xff]  ;;  %v5753_v33 = vunpack.c.l.bf16 %v4638_v32  ;;  %v5755_v34 = vunpack.c.h.bf16 %v4638_v32  ;;  %v4643_v35 = vld [vmem:[%s4584_s30 + $0x48] sm:$0xff]   ;;  %v4654_v39 = vld [vmem:[%s4584_s30 + $0x30] sm:$0xff]  }
  0x19   : > { %4377 = vmatpush.bf16.msra.mxu2 %v4215_v14  ;;  %v5774_v37 = vunpack.c.l.bf16 %v4649_v36  ;;  %v5776_v38 = vunpack.c.h.bf16 %v4649_v36  ;;  %v4660_v40 = vld [vmem:[%s4584_s30 + $0x60] sm:$0xff]   ;;  %v4667_v41 = vld [vmem:[%s4584_s30 + $0x6c] sm:$0xff]   ;;  %v4676_v44 = vld [vmem:[%s4584_s30 + $0x78] sm:$0xff]  }
  0x1a   : > { %5790 = vst [vmem:[#allocation5_spill] sm:$0xff] %v4667_v41  ;;  %v4683_v45 = vld [vmem:[%s4584_s30 + $0x84] sm:$0xff]   ;;  %v4224_v52 = vld [vmem:[%s5748_s1 + $0xf0] sm:$0xff]  ;;  %v4233_v53 = vld [vmem:[%s5748_s1 + $0x138] sm:$0xff] }
  0x1b   : > { %533 = vmatpush.bf16.msra.mxu0 %v4198_v7  ;;  %5791 = vst [vmem:[#allocation6_spill] sm:$0xff] %v4676_v44  ;;  %v4223_v54 = vld [vmem:[%s5748_s1 + $0xe8] sm:$0xff]  ;;  %v4232_v57 = vld [vmem:[%s5748_s1 + $0x130] sm:$0xff]  ;;  %v4222_v58 = vld [vmem:[%s5748_s1 + $0xe0] sm:$0xff] }
  0x1c   : > { %592 = vmatpush.bf16.msra.mxu1 %v4206_v8  ;;  %4370 = vmatpush.bf16.msra.mxu3 %v4206_v8  ;;  %v4231_v59 = vld [vmem:[%s5748_s1 + $0x128] sm:$0xff]  ;;  %v4221_v63 = vld [vmem:[%s5748_s1 + $0xd8] sm:$0xff]  ;;  %v4230_v0 = vld [vmem:[%s5748_s1 + $0x120] sm:$0xff] }
  0x1d   : > { %4378 = vmatpush.bf16.msra.mxu2 %v4214_v18  ;;  %v4241_v1 = vld [vmem:[%s5748_s1 + $0x178] sm:$0xff]  ;;  %v4220_v2 = vld [vmem:[%s5748_s1 + $0xd0] sm:$0xff]  ;;  %v4255_v46 = vld [vmem:[%s5748_s1 + $0x1e8] sm:$0xff] }
  0x1e   : > { %v4240_v8 = vld [vmem:[%s5748_s1 + $0x170] sm:$0xff] }
  0x1f   : > { %534 = vmatpush.bf16.msra.mxu0 %v4197_v9  ;;  %v4219_v9 = vld [vmem:[%s5748_s1 + $0xc8] sm:$0xff] }
  0x20   : > { %593 = vmatpush.bf16.msra.mxu1 %v4205_v10  ;;  %4371 = vmatpush.bf16.msra.mxu3 %v4205_v10  ;;  %v4229_v10 = vld [vmem:[%s5748_s1 + $0x118] sm:$0xff] }
  0x21   : > { %4379 = vmatpush.bf16.msra.mxu2 %v4213_v23 }
  0x23   : > { %535 = vmatpush.bf16.msra.mxu0 %v4196_v12  ;;  %v4753_v12 = vld [vmem:[%s4584_s30 + $0x8] sm:$0x1] }
  0x24   : > { %594 = vmatpush.bf16.msra.mxu1 %v4204_v13  ;;  %4372 = vmatpush.bf16.msra.mxu3 %v4204_v13 }
  0x25   : > { %4380 = vmatpush.bf16.msra.mxu2 %v4212_v25 }
  0x27   : > { %536 = vmatpush.bf16.msra.mxu0 %v4195_v15  ;;  %v5760_v15 = vunpack.c.l.bf16 %v4753_v12 }
  0x28   : > { %595 = vmatpush.bf16.msra.mxu1 %v4203_v16  ;;  %4373 = vmatpush.bf16.msra.mxu3 %v4203_v16  ;;  %v4218_v16 = vld [vmem:[%s5748_s1 + $0xc0] sm:$0xff] }
  0x29   : > { %4381 = vmatpush.bf16.msra.mxu2 %v4211_v26 }
  0x2b   : > { %537 = vmatpush.bf16.msra.mxu0 %v4194_v21 }
  0x2c   : > { %596 = vmatpush.bf16.msra.mxu1 %v4202_v22  ;;  %4374 = vmatpush.bf16.msra.mxu3 %v4202_v22 }
  0x2d   : > { %4382 = vmatpush.bf16.msra.mxu2 %v4210_v30 }
  0x2e   : > { %538 = vmatmul.bf16.vlgmr.msra.gmra.mxu0 %v4613_v24 }
  0x2f   : > { %648 = vmatpush.bf16.msrb.mxu0 %v4217_v4  ;;  %597 = vmatmul.bf16.vlgmr.msra.gmra.mxu1 %v4596_v17  ;;  %v5770_v4 = vunpack.c.l.bf16 %v4613_v24 }
  0x30   : > { %671 = vmatmul.bf16.vlgmr.msra.gmra.mxu2 %v4624_v27  ;;  %632 = vmatmul.bf16.vlgmr.msra.gmra.mxu3 %v4660_v40 }
  0x31   : > { %1053 = vmatpush.bf16.msrb.mxu3 %v4225_v48  ;;  %1171 = vmatpush.bf16.msrb.mxu1 %v4241_v1  ;;  %v764_v13 = vrot.slane %v5770_v4, 1 }
  0x33   : > { %649 = vmatpush.bf16.msrb.mxu0 %v4216_v11  ;;  %v4239_v11 = vld [vmem:[%s5748_s1 + $0x168] sm:$0xff] }
  0x35   : > { %1054 = vmatpush.bf16.msrb.mxu3 %v4224_v52  ;;  %1172 = vmatpush.bf16.msrb.mxu1 %v4240_v8  ;;  %v4237_v52 = vld [vmem:[%s5748_s1 + $0x158] sm:$0xff]  ;;  %v767_v8 = vrot.slane %v5768_v19, 1 }
  0x37   : > { %650 = vmatpush.bf16.msrb.mxu0 %v4215_v14  ;;  %v765_v14 = vrot.slane %v5769_v5, 1 }
  0x39   : > { %1055 = vmatpush.bf16.msrb.mxu3 %v4223_v54  ;;  %1173 = vmatpush.bf16.msrb.mxu1 %v4239_v11  ;;  %v5757_v11 = vunpack.c.h.bf16 %v4632_v31 }
  0x3b   : > { %651 = vmatpush.bf16.msrb.mxu0 %v4214_v18  ;;  %v773_v18 = vrot.slane %v5760_v15, 1 }
  0x3d   : > { %1056 = vmatpush.bf16.msrb.mxu3 %v4222_v58  ;;  %v4236_v58 = vld [vmem:[%s5748_s1 + $0x150] sm:$0xff] }
  0x3e   : > { %543 = vmatmul.bf16.gmra.mxu0 %v4596_v17 }
  0x3f   : > { %652 = vmatpush.bf16.msrb.mxu0 %v4213_v23  ;;  %602 = vmatmul.bf16.gmra.mxu1 %v4632_v31  ;;  %v4238_v23 = vld [vmem:[%s5748_s1 + $0x160] sm:$0xff] }
  0x40   : > { %676 = vmatmul.bf16.gmra.mxu2 %v4643_v35  ;;  %637 = vmatmul.bf16.gmra.mxu3 %v4667_v41 }
  0x41   : > { %1057 = vmatpush.bf16.msrb.mxu3 %v4221_v63  ;;  %1174 = vmatpush.bf16.msrb.mxu1 %v4238_v23  ;;  %v4235_v63 = vld [vmem:[%s5748_s1 + $0x148] sm:$0xff] }
  0x43   : > { %653 = vmatpush.bf16.msrb.mxu0 %v4212_v25  ;;  %v766_v25 = vsel %vm763_vm0, %v764_v13, %v765_v14 }
  0x45   : > { %1058 = vmatpush.bf16.msrb.mxu3 %v4220_v2  ;;  %1175 = vmatpush.bf16.msrb.mxu1 %v4237_v52  ;;  %v4805_v2 = vld [vmem:[%s4584_s30 + $0x20] sm:$0x1] }
  0x47   : > { %654 = vmatpush.bf16.msrb.mxu0 %v4211_v26  ;;  %v774_v26 = vsel %vm763_vm0, %v765_v14, %v773_v18  ;;  %v5756_v14 = vunpack.c.l.bf16 %v4805_v2 }
  0x49   : > { %1059 = vmatpush.bf16.msrb.mxu3 %v4219_v9  ;;  %1176 = vmatpush.bf16.msrb.mxu1 %v4236_v58  ;;  %v768_v9 = vrot.slane %v5767_v20, 1 }
  0x4b   : > { %655 = vmatpush.bf16.msrb.mxu0 %v4210_v30 }
  0x4d   : > { %1060 = vmatpush.bf16.msrb.mxu3 %v4218_v16  ;;  %1177 = vmatpush.bf16.msrb.mxu1 %v4235_v63 }
  0x4e   : > { %548 = vmatmul.bf16.gmra.mxu0 %v4632_v31 }
  0x4f   : > { %607 = vmatmul.bf16.gmra.mxu1 %v4638_v32  ;;  %1112 = vmatpush.bf16.msra.mxu0 %v4233_v53  ;;  %v4227_v53 = vld [vmem:[%s5748_s1 + $0x108] sm:$0xff] }
  0x50   : > { %681 = vmatmul.bf16.gmra.mxu2 %v4649_v36  ;;  %642 = vmatmul.bf16.gmra.mxu3 %v4676_v44 }
  0x53   : > { %1113 = vmatpush.bf16.msra.mxu0 %v4232_v57 }
  0x57   : > { %1114 = vmatpush.bf16.msra.mxu0 %v4231_v59 }
  0x5b   : > { %1115 = vmatpush.bf16.msra.mxu0 %v4230_v0  ;;  %v4801_v0 = vld [vmem:[%s4584_s30 + $0x14] sm:$0x1] }
  0x5c   : > { %v5763_v1 = vunpack.c.l.bf16 %v4801_v0 }
  0x5e   : > { %553 = vmatmul.bf16.gmra.mxu0 %v4638_v32  ;;  %v775_v13 = vrot.slane %v5763_v1, 1 }
  0x5f   : > { %612 = vmatmul.bf16.gmra.mxu1 %v4654_v39  ;;  %1116 = vmatpush.bf16.msra.mxu0 %v4229_v10  ;;  %v5758_v10 = vunpack.c.l.bf16 %v4632_v31 }
  0x60   : > { %686 = vmatmul.bf16.gmra.mxu2 %v4660_v40 }
  0x61   : > { %v770_v23 = vrot.slane %v5758_v10, 1 }
  0x6e   : > { %558 = vmatmul.bf16.gmra.mxu0 %v4654_v39 }
  0x6f   : > { %617 = vmatmul.bf16.gmra.mxu1 %v4624_v27 }
  0x70   : > { %691 = vmatmul.bf16.gmra.mxu2 %v4667_v41 }
  0x7e   : > { %563 = vmatmul.bf16.gmra.mxu0 %v4624_v27 }
  0x7f   : > { %622 = vmatmul.bf16.gmra.mxu1 %v4643_v35 }
  0x80   : > { %696 = vmatmul.bf16.gmra.mxu2 %v4676_v44 }
  0x8e   : > { %568 = vmatmul.bf16.gmra.mxu0 %v4643_v35 }
  0x8f   : > { %627 = vmatmul.bf16.gmra.mxu1 %v4649_v36 }
  0x90   : > { %701 = vmatmul.bf16.gmra.mxu2 %v4683_v45 }
  0x9e   : > { %573 = vmatmul.bf16.gmra.mxu0 %v4649_v36 }
  0xab   : > { %v539_v49 = vpop.f32.mrf.mxu0 }
  0xac   : > { %v598_v50 = vpop.f32.mrf.mxu1 }
  0xad   : > { %v4692_v51 = vadd.f32 %v598_v50, %v539_v49  ;;  %v4228_v49 = vld [vmem:[%s5748_s1 + $0x110] sm:$0xff]  ;;  %v848_v50 = vpack.c.bf16 %v774_v26, %v766_v25  ;;  %v771_v25 = vrot.slane %v5757_v11, 1 }
  0xae   : > { %578 = vmatmul.bf16.gmra.mxu0 %v4660_v40 }
  0xaf   : > { %1061 = vmatmul.bf16.vlgmr.msrb.gmra.mxu3 %v848_v50  ;;  %1117 = vmatpush.bf16.msra.mxu0 %v4228_v49  ;;  %v776_v49 = vsel %vm763_vm0, %v768_v9, %v775_v13  ;;  %v777_v50 = vrot.slane %v5756_v14, 1  ;;  %v4256_v13 = vld [vmem:[%s5748_s1 + $0x1f0] sm:$0xff] }
  0xb3   : > { %v4704_v55 = vpop.f32.mrf.mxu0  ;;  %v4732_v3 = vpop.f32.mrf.mxu2  ;;  %1118 = vmatpush.bf16.msra.mxu0 %v4227_v53  ;;  %v772_v53 = vsel %vm763_vm0, %v770_v23, %v771_v25 }
  0xb4   : > { %v4706_v56 = vpop.f32.mrf.mxu1 }
  0xbb   : > { %v544_v60 = vpop.f32.mrf.mxu0  ;;  %v4772_v48 = vpop.f32.mrf.mxu2 }
  0xbc   : > { %v603_v61 = vpop.f32.mrf.mxu1 }
  0xbd   : > { %v4717_v62 = vadd.f32 %v603_v61, %v544_v60  ;;  %v4257_v60 = vld [vmem:[%s5748_s1 + $0x1f8] sm:$0xff]  ;;  %v4226_v61 = vld [vmem:[%s5748_s1 + $0x100] sm:$0xff] }
  0xbe   : > { %583 = vmatmul.bf16.gmra.mxu0 %v4667_v41  ;;  %1639 = vmatpush.bf16.msra.mxu3 %v4257_v60  ;;  %v4265_v60 = vld [vmem:[%s5748_s1 + $0x238] sm:$0xff] }
  0xbf   : > { %1119 = vmatpush.bf16.msra.mxu0 %v4226_v61  ;;  %v778_v61 = vsel %vm763_vm0, %v771_v25, %v777_v50  ;;  %v779_v25 = vrot.slane %v5753_v33, 1  ;;  %v4264_v33 = vld [vmem:[%s5748_s1 + $0x230] sm:$0xff] }
  0xc0   : > { %v4836_v63 = vpack.c.bf16 %v778_v61, %v772_v53 }
  0xc2   : > { %1640 = vmatpush.bf16.msra.mxu3 %v4256_v13 }
  0xc3   : > { %v4736_v6 = vpop.f32.mrf.mxu0  ;;  %v677_v59 = vpop.f32.mrf.mxu2 }
  0xc4   : > { %v4738_v7 = vpop.f32.mrf.mxu1 }
  0xc6   : > { %1641 = vmatpush.bf16.msra.mxu3 %v4255_v46 }
  0xcb   : > { %v549_v21 = vpop.f32.mrf.mxu0 }
  0xcc   : > { %v608_v22 = vpop.f32.mrf.mxu1 }
  0xcd   : > { %v4770_v30 = vadd.f32 %v608_v22, %v549_v21  ;;  %v4234_v21 = vld [vmem:[%s5748_s1 + $0x140] sm:$0xff]  ;;  %v769_v22 = vsel %vm763_vm0, %v767_v8, %v768_v9  ;;  %v4838_v8 = vpop.f32.mrf.mxu2 }
  0xce   : > { %656 = vmatmul.bf16.vlgmr.msrb.gmra.mxu0 %v4632_v31  ;;  %1178 = vmatpush.bf16.msrb.mxu1 %v4234_v21  ;;  %v849_v52 = vpack.c.bf16 %v776_v49, %v769_v22 }
  0xcf   : > { %1698 = vmatpush.bf16.msrb.mxu0 %v4265_v60 }
  0xd0   : > { %1066 = vmatmul.bf16.gmra.mxu3 %v849_v52 }
  0xd1   : > { %1179 = vmatmul.bf16.vlgmr.msrb.gmra.mxu1 %v4836_v63 }
  0xd3   : > { %v4784_v54 = vpop.f32.mrf.mxu0  ;;  %1699 = vmatpush.bf16.msrb.mxu0 %v4264_v33 }
  0xd4   : > { %v4786_v57 = vpop.f32.mrf.mxu1 }
  0xd5   : > { %v682_v21 = vpop.f32.mrf.mxu2 }
  0xdb   : > { %v554_v16 = vpop.f32.mrf.mxu0 }
  0xdc   : > { %v613_v18 = vpop.f32.mrf.mxu1 }
  0xdd   : > { %v614_v26 = vadd.f32 %v613_v18, %v554_v16  ;;  %v4849_v16 = vld [vmem:[%s4584_s30 + $0x2c] sm:$0x1] }
  0xde   : > { %661 = vmatmul.bf16.gmra.mxu0 %v4638_v32  ;;  %v5754_v18 = vunpack.c.l.bf16 %v4849_v16 }
  0xdf   : > { %v4829_v58 = vadd.f32 %v4732_v3, %v614_v26  ;;  %v780_v26 = vrot.slane %v5755_v34, 1 }
  0xe0   : > { %v782_v49 = vrot.slane %v5754_v18, 1  ;;  %1071 = vmatmul.bf16.gmra.mxu3 %v4836_v63 }
  0xe1   : > { %v781_v53 = vsel %vm763_vm0, %v779_v25, %v780_v26  ;;  %v4874_v25 = vpop.f32.mrf.mxu2 }
  0xe2   : > { %v783_v60 = vsel %vm763_vm0, %v780_v26, %v782_v49  ;;  %v5759_v26 = vunpack.c.l.bf16 %v4654_v39  ;;  %v5762_v49 = vunpack.c.h.bf16 %v4654_v39 }
  0xe3   : > { %v4841_v9 = vpop.f32.mrf.mxu0  ;;  %v4863_v13 = vpack.c.bf16 %v783_v60, %v781_v53 }
  0xe4   : > { %v4843_v3 = vpop.f32.mrf.mxu1  ;;  %v784_v33 = vrot.slane %v5759_v26, 1  ;;  %v785_v18 = vrot.slane %v5762_v49, 1 }
  0xe5   : > { %1184 = vmatmul.bf16.gmra.mxu1 %v4863_v13 }
  0xe6   : > { %v786_v11 = vsel %vm763_vm0, %v784_v33, %v785_v18 }
  0xe9   : > { %v687_v15 = vpop.f32.mrf.mxu2 }
  0xeb   : > { %v559_v22 = vpop.f32.mrf.mxu0 }
  0xec   : > { %v618_v23 = vpop.f32.mrf.mxu1 }
  0xed   : > { %v619_v50 = vadd.f32 %v618_v23, %v559_v22 }
  0xee   : > { %666 = vmatmul.bf16.gmra.mxu0 %v4654_v39 }
  0xef   : > { %v4860_v61 = vadd.f32 %v677_v59, %v619_v50  ;;  %v4877_v59 = vld [vmem:[%s4584_s30 + $0x38] sm:$0x1] }
  0xf0   : > { %v5761_v50 = vunpack.c.l.bf16 %v4877_v59  ;;  %1076 = vmatmul.bf16.gmra.mxu3 %v4863_v13 }
  0xf2   : > { %v787_v34 = vrot.slane %v5761_v50, 1 }
  0xf3   : > { %v4870_v22 = vpop.f32.mrf.mxu0 }
  0xf4   : > { %v4872_v23 = vpop.f32.mrf.mxu1  ;;  %v788_v10 = vsel %vm763_vm0, %v785_v18, %v787_v34  ;;  %v4249_v34 = vld [vmem:[%s5748_s1 + $0x1b8] sm:$0xff] }
  0xf5   : > { %v4895_v26 = vpack.c.bf16 %v788_v10, %v786_v11  ;;  %1580 = vmatpush.bf16.msrb.mxu2 %v4249_v34  ;;  %v4908_v10 = vld [vmem:[%s4584_s30 + $0x44] sm:$0x1]  ;;  %v4910_v11 = vpop.f32.mrf.mxu2 }
  0xf6   : > { %5792 = vst [vmem:[#allocation7_spill] sm:$0xff] %v4910_v11  ;;  %v5766_v46 = vunpack.c.l.bf16 %v4908_v10 }
  0xf7   : > { %1189 = vmatmul.bf16.gmra.mxu1 %v4895_v26 }
  0xfb   : > { %v564_v53 = vpop.f32.mrf.mxu0 }
  0xfc   : > { %v623_v60 = vpop.f32.mrf.mxu1 }
  0xfd   : > { %v624_v14 = vadd.f32 %v623_v60, %v564_v53 }
  0xfe   : > { %1120 = vmatmul.bf16.vlgmr.msra.gmra.mxu0 %v849_v52 }
  0xff   : > { %v4890_v47 = vadd.f32 %v682_v21, %v624_v14  ;;  %v4263_v14 = vld [vmem:[%s5748_s1 + $0x228] sm:$0xff]  ;;  %v789_v21 = vrot.slane %v5764_v28, 1  ;;  %v4254_v28 = vld [vmem:[%s5748_s1 + $0x1e0] sm:$0xff] }
 0x100   : > { %1700 = vmatpush.bf16.msrb.mxu0 %v4263_v14  ;;  %1081 = vmatmul.bf16.gmra.mxu3 %v4895_v26 }
 0x101   : > { %1642 = vmatpush.bf16.msra.mxu3 %v4254_v28  ;;  %v5773_v28 = vunpack.c.l.bf16 %v4643_v35 }
 0x103   : > { %v566_v53 = vpop.f32.mrf.mxu0 }
 0x104   : > { %v625_v60 = vpop.f32.mrf.mxu1 }
 0x105   : > { %v4899_v33 = vadd.f32 %v625_v60, %v566_v53  ;;  %v790_v53 = vrot.slane %v5765_v29, 1  ;;  %v792_v60 = vrot.slane %v5766_v46, 1  ;;  %v633_v29 = vpop.f32.mrf.mxu3 }
 0x107   : > { %v791_v34 = vsel %vm763_vm0, %v789_v21, %v790_v53  ;;  %v793_v14 = vsel %vm763_vm0, %v790_v53, %v792_v60  ;;  %v5771_v53 = vunpack.c.h.bf16 %v4643_v35 }
 0x108   : > { %v4924_v1 = vpack.c.bf16 %v793_v14, %v791_v34  ;;  %v794_v14 = vrot.slane %v5773_v28, 1 }
 0x10a   : > { %1194 = vmatmul.bf16.gmra.mxu1 %v4924_v1 }
 0x10b   : > { %v569_v52 = vpop.f32.mrf.mxu0 }
 0x10c   : > { %v628_v18 = vpop.f32.mrf.mxu1 }
 0x10d   : > { %v629_v50 = vadd.f32 %v628_v18, %v569_v52  ;;  %v692_v18 = vpop.f32.mrf.mxu2  ;;  %v4942_v21 = vpop.f32.mrf.mxu3 }
 0x10e   : > { %1125 = vmatmul.bf16.gmra.mxu0 %v4836_v63  ;;  %v4262_v63 = vld [vmem:[%s5748_s1 + $0x220] sm:$0xff]  ;;  %5793 = vst [vmem:[#allocation8_spill] sm:$0xff] %v4942_v21 }
 0x10f   : > { %v4921_v49 = vadd.f32 %v687_v15, %v629_v50  ;;  %v4248_v15 = vld [vmem:[%s5748_s1 + $0x1b0] sm:$0xff]  ;;  %1701 = vmatpush.bf16.msrb.mxu0 %v4262_v63 }
 0x110   : > { %1581 = vmatpush.bf16.msrb.mxu2 %v4248_v15  ;;  %v4940_v50 = vld [vmem:[%s4584_s30 + $0x50] sm:$0x1]  ;;  %v795_v15 = vrot.slane %v5771_v53, 1  ;;  %v4247_v53 = vld [vmem:[%s5748_s1 + $0x1a8] sm:$0xff]  ;;  %1086 = vmatmul.bf16.gmra.mxu3 %v4924_v1 }
 0x111   : > { %v5772_v60 = vunpack.c.l.bf16 %v4940_v50 }
 0x112   : > { %v796_v19 = vsel %vm763_vm0, %v794_v14, %v795_v15  ;;  %v799_v14 = vrot.slane %v5774_v37, 1  ;;  %v4261_v37 = vld [vmem:[%s5748_s1 + $0x218] sm:$0xff] }
 0x113   : > { %v4931_v52 = vpop.f32.mrf.mxu0  ;;  %v797_v63 = vrot.slane %v5772_v60, 1  ;;  %1702 = vmatpush.bf16.msrb.mxu0 %v4261_v37  ;;  %v5779_v37 = vunpack.c.h.bf16 %v4660_v40 }
 0x114   : > { %1582 = vmatpush.bf16.msrb.mxu2 %v4247_v53  ;;  %v800_v53 = vrot.slane %v5776_v38, 1 }
 0x115   : > { %v4953_v20 = vpop.f32.mrf.mxu2  ;;  %v798_v5 = vsel %vm763_vm0, %v795_v15, %v797_v63 }
 0x116   : > { %5794 = vst [vmem:[#allocation9_spill] sm:$0xff] %v4953_v20  ;;  %v4960_v43 = vpack.c.bf16 %v798_v5, %v796_v19  ;;  %v4973_v19 = vld [vmem:[%s4584_s30 + $0x5c] sm:$0x1]  ;;  %v801_v28 = vsel %vm763_vm0, %v799_v14, %v800_v53 }
 0x117   : > { %v5775_v5 = vunpack.c.l.bf16 %v4973_v19 }
 0x119   : > { %v802_v15 = vrot.slane %v5775_v5, 1 }
 0x11a   : > { %1199 = vmatmul.bf16.gmra.mxu1 %v4960_v43 }
 0x11b   : > { %v574_v34 = vpop.f32.mrf.mxu0 }
 0x11c   : > { %v634_v46 = vadd.f32 %v633_v29, %v574_v34  ;;  %v638_v34 = vpop.f32.mrf.mxu3 }
 0x11e   : > { %v4957_v4 = vadd.f32 %v692_v18, %v634_v46  ;;  %1130 = vmatmul.bf16.gmra.mxu0 %v4863_v13  ;;  %v4253_v46 = vld [vmem:[%s5748_s1 + $0x1d8] sm:$0xff]  ;;  %v697_v18 = vpop.f32.mrf.mxu2 }
 0x11f   : > { %1643 = vmatpush.bf16.msra.mxu3 %v4253_v46  ;;  %v803_v46 = vsel %vm763_vm0, %v800_v53, %v802_v15  ;;  %v5003_v15 = vld [vmem:[%s4584_s30 + $0x68] sm:$0x1] }
 0x120   : > { %5795 = vst [vmem:[#allocation10_spill] sm:$0xff] %v4957_v4  ;;  %v4990_v20 = vpack.c.bf16 %v803_v46, %v801_v28  ;;  %1091 = vmatmul.bf16.gmra.mxu3 %v4960_v43  ;;  %v5778_v46 = vunpack.c.l.bf16 %v5003_v15 }
 0x123   : > { %v4967_v29 = vpop.f32.mrf.mxu0 }
 0x124   : > { %5796 = vst [vmem:[#allocation11_spill] sm:$0xff] %v4967_v29  ;;  %v640_v60 = vpop.f32.mrf.mxu3 }
 0x12a   : > { %1204 = vmatmul.bf16.gmra.mxu1 %v4990_v20 }
 0x12b   : > { %v579_v13 = vpop.f32.mrf.mxu0 }
 0x12c   : > { %v639_v63 = vadd.f32 %v638_v34, %v579_v13  ;;  %v4246_v34 = vld [vmem:[%s5748_s1 + $0x1a0] sm:$0xff]  ;;  %v699_v13 = vpop.f32.mrf.mxu2  ;;  %v643_v28 = vpop.f32.mrf.mxu3 }
 0x12d   : > { %1583 = vmatpush.bf16.msrb.mxu2 %v4246_v34 }
 0x12e   : > { %v4984_v42 = vadd.f32 %v697_v18, %v639_v63  ;;  %1135 = vmatmul.bf16.gmra.mxu0 %v4895_v26  ;;  %v4252_v26 = vld [vmem:[%s5748_s1 + $0x1d0] sm:$0xff]  ;;  %v5777_v63 = vunpack.c.l.bf16 %v4660_v40 }
 0x12f   : > { %1644 = vmatpush.bf16.msra.mxu3 %v4252_v26 }
 0x130   : > { %5797 = vst [vmem:[#allocation12_spill] sm:$0xff] %v4984_v42  ;;  %1096 = vmatmul.bf16.gmra.mxu3 %v4990_v20 }
 0x133   : > { %v581_v18 = vpop.f32.mrf.mxu0 }
 0x134   : > { %v641_v14 = vadd.f32 %v640_v60, %v581_v18  ;;  %v702_v5 = vpop.f32.mrf.mxu2  ;;  %v804_v60 = vrot.slane %v5777_v63, 1  ;;  %v805_v18 = vrot.slane %v5779_v37, 1  ;;  %v4245_v63 = vld [vmem:[%s5748_s1 + $0x198] sm:$0xff] }
 0x135   : > { %1584 = vmatpush.bf16.msrb.mxu2 %v4245_v63 }
 0x136   : > { %v5000_v53 = vadd.f32 %v699_v13, %v641_v14  ;;  %v807_v13 = vrot.slane %v5778_v46, 1  ;;  %v806_v26 = vsel %vm763_vm0, %v804_v60, %v805_v18  ;;  %v4260_v46 = vld [vmem:[%s5748_s1 + $0x210] sm:$0xff] }
 0x137   : > { %1703 = vmatpush.bf16.msrb.mxu0 %v4260_v46 }
 0x138   : > { %5798 = vst [vmem:[#allocation13_spill] sm:$0xff] %v5000_v53  ;;  %v808_v38 = vsel %vm763_vm0, %v805_v18, %v807_v13  ;;  %v5802_v18 = vunpack.c.l.bf16 %v4667_v41 }
 0x139   : > { %v5022_v42 = vpack.c.bf16 %v808_v38, %v806_v26 }
 0x13a   : > { %v809_v13 = vrot.slane %v5802_v18, 1  ;;  %v4251_v18 = vld [vmem:[%s5748_s1 + $0x1c8] sm:$0xff] }
 0x13b   : > { %v584_v34 = vpop.f32.mrf.mxu0  ;;  %1209 = vmatmul.bf16.gmra.mxu1 %v5022_v42  ;;  %1645 = vmatpush.bf16.msra.mxu3 %v4251_v18 }
 0x13c   : > { %v644_v14 = vadd.f32 %v643_v28, %v584_v34  ;;  %v645_v28 = vpop.f32.mrf.mxu3 }
 0x13e   : > { %v5016_v53 = vadd.f32 %v702_v5, %v644_v14  ;;  %1140 = vmatmul.bf16.gmra.mxu0 %v4924_v1  ;;  %v5032_v1 = vld [vmem:[%s4584_s30 + $0x74] sm:$0x1]  ;;  %v5803_v14 = vunpack.c.h.bf16 %v4667_v41 }
 0x13f   : > { %5801 = vst [vmem:[#allocation16_spill] sm:$0xff] %v5032_v1  ;;  %v5780_v60 = vunpack.c.l.bf16 %v5032_v1 }
 0x140   : > { %5799 = vst [vmem:[#allocation14_spill] sm:$0xff] %v5016_v53  ;;  %v810_v26 = vrot.slane %v5803_v14, 1  ;;  %1101 = vmatmul.bf16.gmra.mxu3 %v5022_v42 }
 0x141   : > { %v812_v63 = vrot.slane %v5780_v60, 1 }
 0x143   : > { %v586_v5 = vpop.f32.mrf.mxu0  ;;  %v813_v37 = vsel %vm763_vm0, %v810_v26, %v812_v63  ;;  %v5069_v63 = vpop.f32.mrf.mxu1 }
 0x144   : > { %v5029_v34 = vadd.f32 %v645_v28, %v586_v5  ;;  %v4244_v28 = vld [vmem:[%s5748_s1 + $0x190] sm:$0xff]  ;;  %v811_v5 = vsel %vm763_vm0, %v809_v13, %v810_v26  ;;  %v4259_v26 = vld [vmem:[%s5748_s1 + $0x208] sm:$0xff]  ;;  %5804 = vst [vmem:[#allocation17_spill] sm:$0xff] %v5069_v63 }
 0x145   : > { %1585 = vmatpush.bf16.msrb.mxu2 %v4244_v28  ;;  %v5053_v14 = vpack.c.bf16 %v813_v37, %v811_v5  ;;  %v4243_v37 = vld [vmem:[%s5748_s1 + $0x188] sm:$0xff]  ;;  %1704 = vmatpush.bf16.msrb.mxu0 %v4259_v26  ;;  %v5783_v28 = vunpack.c.l.bf16 %v4676_v44  ;;  %v5781_v5 = vunpack.c.h.bf16 %v4676_v44  ;;  %v5809_v44 = vunpack.c.h.bf16 %v4596_v17 }
 0x146   : > { %5800 = vst [vmem:[#allocation15_spill] sm:$0xff] %v5029_v34 }
 0x147   : > { %v815_v60 = vrot.slane %v5781_v5, 1  ;;  %v4250_v5 = vld [vmem:[%s5748_s1 + $0x1c0] sm:$0xff]  ;;  %v1295_v4 = vrot.slane %v5809_v44, 2 }
 0x148   : > { %1646 = vmatpush.bf16.msra.mxu3 %v4250_v5  ;;  %v4242_v5 = vld [vmem:[%s5748_s1 + $0x180] sm:$0xff] }
 0x149   : > { %1586 = vmatpush.bf16.msrb.mxu2 %v4243_v37 }
 0x14b   : > { %v657_v38 = vpop.f32.mrf.mxu0  ;;  %1214 = vmatmul.bf16.gmra.mxu1 %v5053_v14 }
 0x14c   : > { %v5042_v46 = vadd.f32 %v657_v38, %v4692_v51  ;;  %v5057_v51 = vpop.f32.mrf.mxu3  ;;  %v601_v38 = vadd.f32 %v4706_v56, %v4704_v55  ;;  %v5074_v55 = vld [vmem:[%s4584_s30 + $0x80] sm:$0x1] }
 0x14d   : > { %5805 = vst [vmem:[#allocation18_spill] sm:$0xff] %v5074_v55  ;;  %v5782_v18 = vunpack.c.l.bf16 %v5074_v55  ;;  %1587 = vmatpush.bf16.msrb.mxu2 %v4242_v5  ;;  %v5812_v5 = vunpack.c.l.bf16 %v4683_v45 }
 0x14e   : > { %1145 = vmatmul.bf16.gmra.mxu0 %v4960_v43  ;;  %v1180_v21 = vpop.f32.mrf.mxu1 }
 0x14f   : > { %v817_v26 = vrot.slane %v5782_v18, 1 }
 0x150   : > { %1106 = vmatmul.bf16.gmra.mxu3 %v5053_v14 }
 0x151   : > { %v818_v53 = vsel %vm763_vm0, %v815_v60, %v817_v26  ;;  %v5807_v26 = vunpack.c.h.bf16 %v4613_v24 }
 0x153   : > { %v659_v13 = vpop.f32.mrf.mxu0  ;;  %v1292_v18 = vrot.slane %v5807_v26, 2 }
 0x154   : > { %v5061_v43 = vadd.f32 %v659_v13, %v601_v38  ;;  %v5076_v56 = vpop.f32.mrf.mxu3  ;;  %v814_v13 = vrot.slane %v5783_v28, 1  ;;  %v5808_v28 = vunpack.c.l.bf16 %v4596_v17 }
 0x156   : > { %v816_v34 = vsel %vm763_vm0, %v814_v13, %v815_v60  ;;  %v1182_v13 = vpop.f32.mrf.mxu1  ;;  %v1294_v55 = vrot.slane %v5808_v28, 2  ;;  %v819_v28 = vrot.slane %v5812_v5, 1 }
 0x157   : > { %v5091_v29 = vpack.c.bf16 %v818_v53, %v816_v34  ;;  %v5806_v53 = vunpack.c.l.bf16 %v4613_v24  ;;  %v5811_v24 = vunpack.c.l.bf16 %v4753_v12 }
 0x159   : > { %v1291_v34 = vrot.slane %v5806_v53, 2  ;;  %v1300_v53 = vrot.slane %v5811_v24, 2 }
 0x15b   : > { %v662_v38 = vpop.f32.mrf.mxu0  ;;  %1219 = vmatmul.bf16.gmra.mxu1 %v5091_v29  ;;  %v1301_v26 = vsel %vm1290_vm1, %v1292_v18, %v1300_v53 }
 0x15c   : > { %v5086_v37 = vadd.f32 %v662_v38, %v4717_v62  ;;  %v606_v62 = vadd.f32 %v4738_v7, %v4736_v6  ;;  %v5100_v38 = vpop.f32.mrf.mxu3  ;;  %v5810_v6 = vunpack.c.l.bf16 %v4801_v0  ;;  %v1293_v0 = vsel %vm1290_vm1, %v1291_v34, %v1292_v18 }
 0x15d   : > { %v1375_v12 = vpack.c.bf16 %v1301_v26, %v1293_v0  ;;  %v5816_v26 = vunpack.c.h.bf16 %v4632_v31 }
 0x15e   : > { %1150 = vmatmul.bf16.gmra.mxu0 %v4990_v20  ;;  %v1302_v7 = vrot.slane %v5810_v6, 2  ;;  %v1296_v6 = vsel %vm1290_vm1, %v1294_v55, %v1295_v4 }
 0x15f   : > { %1588 = vmatmul.bf16.vlgmr.msrb.gmra.mxu2 %v1375_v12 }
 0x160   : > { %v1303_v1 = vsel %vm1290_vm1, %v1295_v4, %v1302_v7 }
 0x161   : > { %v1376_v24 = vpack.c.bf16 %v1303_v1, %v1296_v6  ;;  %v611_v1 = vadd.f32 %v4786_v57, %v4784_v54  ;;  %v1298_v6 = vrot.slane %v5816_v26, 2 }
 0x162   : > { %v1185_v18 = vpop.f32.mrf.mxu1 }
 0x163   : > { %v664_v60 = vpop.f32.mrf.mxu0  ;;  %1647 = vmatmul.bf16.vlgmr.msra.gmra.mxu3 %v1376_v24 }
 0x164   : > { %v5102_v20 = vadd.f32 %v664_v60, %v606_v62  ;;  %v4258_v62 = vld [vmem:[%s5748_s1 + $0x200] sm:$0xff]  ;;  %v5121_v60 = vld [vmem:[%s4584_s30 + $0x8c] sm:$0x1]  ;;  %v5126_v17 = vpop.f32.mrf.mxu3 }
 0x165   : > { %1705 = vmatpush.bf16.msrb.mxu0 %v4258_v62  ;;  %v5813_v62 = vunpack.c.h.bf16 %v4683_v45  ;;  %v5814_v63 = vunpack.c.l.bf16 %v5121_v60 }
 0x167   : > { %v820_v11 = vrot.slane %v5813_v62, 1  ;;  %v822_v34 = vrot.slane %v5814_v63, 1  ;;  %v5815_v63 = vunpack.c.l.bf16 %v4632_v31 }
 0x169   : > { %v821_v4 = vsel %vm763_vm0, %v819_v28, %v820_v11  ;;  %v5817_v28 = vunpack.c.l.bf16 %v4805_v2 }
 0x16a   : > { %v1187_v0 = vpop.f32.mrf.mxu1 }
 0x16b   : > { %v667_v44 = vpop.f32.mrf.mxu0  ;;  %v1304_v12 = vrot.slane %v5817_v28, 2 }
 0x16c   : > { %v5133_v41 = vadd.f32 %v667_v44, %v4770_v30  ;;  %v823_v30 = vsel %vm763_vm0, %v820_v11, %v822_v34  ;;  %v1072_v7 = vpop.f32.mrf.mxu3 }
 0x16d   : > { %v859_v55 = vpack.c.bf16 %v823_v30, %v821_v4  ;;  %v1305_v54 = vsel %vm1290_vm1, %v1298_v6, %v1304_v12 }
 0x16e   : > { %1155 = vmatmul.bf16.gmra.mxu0 %v5022_v42  ;;  %v1297_v42 = vrot.slane %v5815_v63, 2 }
 0x16f   : > { %1224 = vmatmul.bf16.gmra.mxu1 %v859_v55  ;;  %1593 = vmatmul.bf16.gmra.mxu2 %v1376_v24  ;;  %v5820_v24 = vunpack.c.l.bf16 %v4849_v16 }
 0x170   : > { %v1299_v62 = vsel %vm1290_vm1, %v1297_v42, %v1298_v6 }
 0x171   : > { %v1377_v34 = vpack.c.bf16 %v1305_v54, %v1299_v62  ;;  %v1309_v6 = vrot.slane %v5820_v24, 2 }
 0x173   : > { %v669_v53 = vpop.f32.mrf.mxu0  ;;  %1652 = vmatmul.bf16.gmra.mxu3 %v1377_v34 }
 0x174   : > { %v5146_v44 = vadd.f32 %v669_v53, %v611_v1  ;;  %v1074_v11 = vpop.f32.mrf.mxu3  ;;  %v1190_v30 = vpop.f32.mrf.mxu1 }
 0x17b   : > { %v1121_v5 = vpop.f32.mrf.mxu0 }
 0x17c   : > { %v1122_v57 = vadd.f32 %v1121_v5, %v5057_v51  ;;  %v1077_v2 = vpop.f32.mrf.mxu3  ;;  %v1192_v63 = vpop.f32.mrf.mxu1  ;;  %v5818_v51 = vunpack.c.l.bf16 %v4638_v32 }
 0x17e   : > { %v1181_v4 = vadd.f32 %v1180_v21, %v1122_v57  ;;  %1160 = vmatmul.bf16.gmra.mxu0 %v5053_v14  ;;  %v1306_v21 = vrot.slane %v5818_v51, 2  ;;  %v5819_v14 = vunpack.c.h.bf16 %v4638_v32 }
 0x17f   : > { %1598 = vmatmul.bf16.gmra.mxu2 %v1377_v34 }
 0x180   : > { %v5159_v31 = vadd.f32 %v1181_v4, %v5042_v46  ;;  %v1307_v26 = vrot.slane %v5819_v14, 2 }
 0x182   : > { %v1308_v12 = vsel %vm1290_vm1, %v1306_v21, %v1307_v26 }
 0x183   : > { %v1123_v55 = vpop.f32.mrf.mxu0 }
 0x184   : > { %v1124_v1 = vadd.f32 %v1123_v55, %v5076_v56  ;;  %v1079_v46 = vpop.f32.mrf.mxu3  ;;  %v1310_v56 = vsel %vm1290_vm1, %v1307_v26, %v1309_v6 }
 0x185   : > { %v1378_v5 = vpack.c.bf16 %v1310_v56, %v1308_v12 }
 0x186   : > { %v1183_v53 = vadd.f32 %v1182_v13, %v1124_v1 }
 0x187   : > { %1657 = vmatmul.bf16.gmra.mxu3 %v1378_v5  ;;  %v1195_v62 = vpop.f32.mrf.mxu1 }
 0x188   : > { %v5163_v42 = vadd.f32 %v1183_v53, %v5061_v43  ;;  %v5823_v53 = vunpack.c.l.bf16 %v4877_v59 }
 0x18a   : > { %v1314_v51 = vrot.slane %v5823_v53, 2 }
 0x18b   : > { %v1126_v28 = vpop.f32.mrf.mxu0 }
 0x18c   : > { %v1127_v13 = vadd.f32 %v1126_v28, %v5100_v38  ;;  %v1082_v16 = vpop.f32.mrf.mxu3  ;;  %v5821_v38 = vunpack.c.l.bf16 %v4654_v39 }
 0x18e   : > { %v1186_v43 = vadd.f32 %v1185_v18, %v1127_v13  ;;  %1165 = vmatmul.bf16.gmra.mxu0 %v5091_v29  ;;  %v1311_v1 = vrot.slane %v5821_v38, 2  ;;  %v5822_v18 = vunpack.c.h.bf16 %v4654_v39 }
 0x18f   : > { %v1197_v14 = vpop.f32.mrf.mxu1  ;;  %1603 = vmatmul.bf16.gmra.mxu2 %v1378_v5 }
 0x190   : > { %v5176_v32 = vadd.f32 %v1186_v43, %v5086_v37  ;;  %v1312_v29 = vrot.slane %v5822_v18, 2  ;;  %v5824_v43 = vunpack.c.l.bf16 %v4624_v27 }
 0x192   : > { %v1313_v26 = vsel %vm1290_vm1, %v1311_v1, %v1312_v29 }
 0x193   : > { %v1128_v54 = vpop.f32.mrf.mxu0 }
 0x194   : > { %v1129_v57 = vadd.f32 %v1128_v54, %v5126_v17  ;;  %v1084_v37 = vpop.f32.mrf.mxu3  ;;  %v1315_v17 = vsel %vm1290_vm1, %v1312_v29, %v1314_v51  ;;  %v1316_v54 = vrot.slane %v5824_v43, 2 }
 0x195   : > { %v1379_v24 = vpack.c.bf16 %v1315_v17, %v1313_v26 }
 0x196   : > { %v1188_v4 = vadd.f32 %v1187_v0, %v1129_v57 }
 0x197   : > { %1662 = vmatmul.bf16.gmra.mxu3 %v1379_v24  ;;  %v1200_v12 = vpop.f32.mrf.mxu1 }
 0x198   : > { %v5180_v55 = vadd.f32 %v1188_v4, %v5102_v20 }
 0x19b   : > { %v1131_v21 = vpop.f32.mrf.mxu0 }
 0x19c   : > { %v1132_v0 = vadd.f32 %v1131_v21, %v1072_v7  ;;  %v1087_v39 = vpop.f32.mrf.mxu3  ;;  %v5825_v7 = vunpack.c.h.bf16 %v4624_v27  ;;  %v616_v27 = vadd.f32 %v4843_v3, %v4841_v9 }
 0x19e   : > { %v1191_v20 = vadd.f32 %v1190_v30, %v1132_v0  ;;  %1706 = vmatmul.bf16.vlgmr.msrb.gmra.mxu0 %v1377_v34  ;;  %v1317_v30 = vrot.slane %v5825_v7, 2  ;;  %v5826_v34 = vunpack.c.l.bf16 %v4908_v10  ;;  %v675_v21 = vadd.f32 %v4772_v48, %v616_v27 }
 0x19f   : > { %1608 = vmatmul.bf16.gmra.mxu2 %v1379_v24  ;;  %v5828_v0 = vunpack.c.h.bf16 %v4643_v35 }
 0x1a0   : > { %v5191_v6 = vadd.f32 %v1191_v20, %v5133_v41  ;;  %v1319_v57 = vrot.slane %v5826_v34, 2  ;;  %v1318_v38 = vsel %vm1290_vm1, %v1316_v54, %v1317_v30 }
 0x1a1   : > { %v1322_v20 = vrot.slane %v5828_v0, 2 }
 0x1a3   : > { %v1133_v28 = vpop.f32.mrf.mxu0 }
 0x1a4   : > { %v1134_v59 = vadd.f32 %v1133_v28, %v1074_v11  ;;  %v1089_v4 = vpop.f32.mrf.mxu3  ;;  %v1320_v11 = vsel %vm1290_vm1, %v1317_v30, %v1319_v57 }
 0x1a6   : > { %v1193_v56 = vadd.f32 %v1192_v63, %v1134_v59  ;;  %v1380_v63 = vpack.c.bf16 %v1320_v11, %v1318_v38 }
 0x1a8   : > { %v5194_v13 = vadd.f32 %v1193_v56, %v5146_v44  ;;  %v1202_v44 = vpop.f32.mrf.mxu1  ;;  %1667 = vmatmul.bf16.gmra.mxu3 %v1380_v63 }
 0x1ab   : > { %v1136_v41 = vpop.f32.mrf.mxu0 }
 0x1ac   : > { %v1137_v1 = vadd.f32 %v1136_v41, %v1077_v2  ;;  %v1092_v10 = vpop.f32.mrf.mxu3 }
 0x1ae   : > { %v1196_v18 = vadd.f32 %v1195_v62, %v1137_v1  ;;  %1711 = vmatmul.bf16.gmra.mxu0 %v1378_v5  ;;  %v5827_v5 = vunpack.c.l.bf16 %v4643_v35  ;;  %v621_v35 = vadd.f32 %v4872_v23, %v4870_v22 }
 0x1af   : > { %1613 = vmatmul.bf16.gmra.mxu2 %v1380_v63 }
 0x1b0   : > { %v5205_v29 = vadd.f32 %v1196_v18, %v4829_v58  ;;  %v1205_v2 = vpop.f32.mrf.mxu1  ;;  %v1321_v62 = vrot.slane %v5827_v5, 2  ;;  %v5829_v58 = vunpack.c.l.bf16 %v4940_v50  ;;  %v680_v34 = vadd.f32 %v4838_v8, %v621_v35 }
 0x1b2   : > { %v1324_v28 = vrot.slane %v5829_v58, 2  ;;  %v1323_v3 = vsel %vm1290_vm1, %v1321_v62, %v1322_v20 }
 0x1b3   : > { %v1138_v53 = vpop.f32.mrf.mxu0 }
 0x1b4   : > { %v1139_v51 = vadd.f32 %v1138_v53, %v1079_v46  ;;  %v1094_v59 = vpop.f32.mrf.mxu3  ;;  %v1325_v46 = vsel %vm1290_vm1, %v1322_v20, %v1324_v28 }
 0x1b6   : > { %v1198_v26 = vadd.f32 %v1197_v14, %v1139_v51  ;;  %v1381_v14 = vpack.c.bf16 %v1325_v46, %v1323_v3 }
 0x1b8   : > { %v5210_v17 = vadd.f32 %v1198_v26, %v675_v21  ;;  %1672 = vmatmul.bf16.gmra.mxu3 %v1381_v14  ;;  %v1207_v7 = vpop.f32.mrf.mxu1  ;;  %v685_v21 = vadd.f32 %v4874_v25, %v4899_v33 }
 0x1bb   : > { %v1141_v9 = vpop.f32.mrf.mxu0 }
 0x1bc   : > { %v1142_v48 = vadd.f32 %v1141_v9, %v1082_v16  ;;  %v1097_v50 = vpop.f32.mrf.mxu3  ;;  %v5830_v16 = vunpack.c.l.bf16 %v4649_v36 }
 0x1be   : > { %v1201_v56 = vadd.f32 %v1200_v12, %v1142_v48  ;;  %1716 = vmatmul.bf16.gmra.mxu0 %v1379_v24  ;;  %v1326_v24 = vrot.slane %v5830_v16, 2  ;;  %v5831_v12 = vunpack.c.h.bf16 %v4649_v36  ;;  %v5836_v48 = vld [vmem:[#allocation17_spill] sm:$0xff] }
 0x1bf   : > { %1618 = vmatmul.bf16.gmra.mxu2 %v1381_v14  ;;  %v5838_v16 = vld [vmem:[#allocation5_spill] sm:$0xff] }
 0x1c0   : > { %v5221_v43 = vadd.f32 %v1201_v56, %v4860_v61  ;;  %v1327_v38 = vrot.slane %v5831_v12, 2  ;;  %v5832_v61 = vunpack.c.l.bf16 %v4973_v19  ;;  %v5840_v12 = vunpack.c.h.bf16 %v5838_v16 }
 0x1c2   : > { %v1329_v11 = vrot.slane %v5832_v61, 2  ;;  %v1328_v23 = vsel %vm1290_vm1, %v1326_v24, %v1327_v38 }
 0x1c3   : > { %v1143_v54 = vpop.f32.mrf.mxu0 }
 0x1c4   : > { %v1144_v30 = vadd.f32 %v1143_v54, %v1084_v37  ;;  %v1099_v1 = vpop.f32.mrf.mxu3  ;;  %v1330_v37 = vsel %vm1290_vm1, %v1327_v38, %v1329_v11  ;;  %v5841_v38 = vld [vmem:[#allocation16_spill] sm:$0xff] }
 0x1c5   : > { %v1382_v8 = vpack.c.bf16 %v1330_v37, %v1328_v23  ;;  %v5842_v61 = vunpack.c.l.bf16 %v5841_v38 }
 0x1c6   : > { %v1203_v57 = vadd.f32 %v1202_v44, %v1144_v30  ;;  %v1210_v44 = vpop.f32.mrf.mxu1 }
 0x1c7   : > { %v1339_v11 = vrot.slane %v5842_v61, 2 }
 0x1c8   : > { %v5226_v41 = vadd.f32 %v1203_v57, %v680_v34  ;;  %1677 = vmatmul.bf16.gmra.mxu3 %v1382_v8 }
 0x1cb   : > { %v1146_v22 = vpop.f32.mrf.mxu0 }
 0x1cc   : > { %v1147_v18 = vadd.f32 %v1146_v22, %v1087_v39  ;;  %v5239_v36 = vpop.f32.mrf.mxu3  ;;  %v5833_v39 = vunpack.c.l.bf16 %v4660_v40 }
 0x1ce   : > { %v1206_v27 = vadd.f32 %v1205_v2, %v1147_v18  ;;  %1721 = vmatmul.bf16.gmra.mxu0 %v1380_v63  ;;  %v1212_v5 = vpop.f32.mrf.mxu1  ;;  %v1331_v2 = vrot.slane %v5833_v39, 2  ;;  %v5834_v63 = vunpack.c.h.bf16 %v4660_v40 }
 0x1cf   : > { %1623 = vmatmul.bf16.gmra.mxu2 %v1382_v8 }
 0x1d0   : > { %v5237_v53 = vadd.f32 %v1206_v27, %v4890_v47  ;;  %v1332_v0 = vrot.slane %v5834_v63, 2  ;;  %v5835_v47 = vunpack.c.l.bf16 %v5003_v15  ;;  %v631_v15 = vadd.f32 %v5836_v48, %v4931_v52  ;;  %v5850_v48 = vld [vmem:[#allocation18_spill] sm:$0xff] }
 0x1d2   : > { %v1334_v20 = vrot.slane %v5835_v47, 2 }
 0x1d3   : > { %v1148_v19 = vpop.f32.mrf.mxu0 }
 0x1d4   : > { %v1149_v51 = vadd.f32 %v1148_v19, %v1089_v4  ;;  %v1104_v58 = vpop.f32.mrf.mxu3  ;;  %v1333_v4 = vsel %vm1290_vm1, %v1331_v2, %v1332_v0  ;;  %v1335_v9 = vsel %vm1290_vm1, %v1332_v0, %v1334_v20  ;;  %v5843_v19 = vld [vmem:[#allocation10_spill] sm:$0xff]  ;;  %v5846_v20 = vld [vmem:[#allocation9_spill] sm:$0xff] }
 0x1d5   : > { %v1383_v33 = vpack.c.bf16 %v1335_v9, %v1333_v4  ;;  %v5847_v9 = vld [vmem:[#allocation6_spill] sm:$0xff] }
 0x1d6   : > { %v1208_v26 = vadd.f32 %v1207_v7, %v1149_v51  ;;  %v1215_v40 = vpop.f32.mrf.mxu1  ;;  %v5837_v7 = vld [vmem:[#allocation7_spill] sm:$0xff] }
 0x1d7   : > { %v690_v30 = vadd.f32 %v5837_v7, %v631_v15  ;;  %v5851_v15 = vunpack.c.l.bf16 %v5850_v48 }
 0x1d8   : > { %v5243_v62 = vadd.f32 %v1208_v26, %v685_v21  ;;  %1682 = vmatmul.bf16.gmra.mxu3 %v1383_v33  ;;  %v5844_v26 = vld [vmem:[#allocation11_spill] sm:$0xff] }
 0x1db   : > { %v1151_v28 = vpop.f32.mrf.mxu0 }
 0x1dc   : > { %v1152_v25 = vadd.f32 %v1151_v28, %v1092_v10  ;;  %v1107_v56 = vpop.f32.mrf.mxu3  ;;  %v704_v10 = vpop.f32.mrf.mxu2 }
 0x1de   : > { %v1211_v3 = vadd.f32 %v1210_v44, %v1152_v25  ;;  %1726 = vmatmul.bf16.gmra.mxu0 %v1381_v14  ;;  %v5839_v14 = vunpack.c.l.bf16 %v5838_v16  ;;  %v1217_v23 = vpop.f32.mrf.mxu1 }
 0x1df   : > { %1628 = vmatmul.bf16.gmra.mxu2 %v1383_v33 }
 0x1e0   : > { %v5254_v46 = vadd.f32 %v1211_v3, %v4921_v49  ;;  %v1336_v24 = vrot.slane %v5839_v14, 2  ;;  %v1337_v49 = vrot.slane %v5840_v12, 2  ;;  %v5849_v3 = vunpack.c.h.bf16 %v5847_v9 }
 0x1e2   : > { %v1340_v37 = vsel %vm1290_vm1, %v1337_v49, %v1339_v11 }
 0x1e3   : > { %v1153_v35 = vpop.f32.mrf.mxu0 }
 0x1e4   : > { %v1154_v54 = vadd.f32 %v1153_v35, %v1094_v59  ;;  %v1109_v22 = vpop.f32.mrf.mxu3  ;;  %v1338_v59 = vsel %vm1290_vm1, %v1336_v24, %v1337_v49  ;;  %v1589_v21 = vpop.f32.mrf.mxu2  ;;  %v1344_v35 = vrot.slane %v5851_v15, 2  ;;  %v5852_v49 = vld [vmem:[#allocation12_spill] sm:$0xff] }
 0x1e5   : > { %v1384_v44 = vpack.c.bf16 %v1340_v37, %v1338_v59  ;;  %v5853_v37 = vld [vmem:[#allocation13_spill] sm:$0xff] }
 0x1e6   : > { %v1213_v34 = vadd.f32 %v1212_v5, %v1154_v54  ;;  %v5845_v5 = vld [vmem:[#allocation8_spill] sm:$0xff]  ;;  %v1220_v47 = vpop.f32.mrf.mxu1 }
 0x1e7   : > { %v636_v39 = vadd.f32 %v5845_v5, %v5844_v26 }
 0x1e8   : > { %v5259_v57 = vadd.f32 %v1213_v34, %v690_v30  ;;  %1687 = vmatmul.bf16.gmra.mxu3 %v1384_v44 }
 0x1e9   : > { %v695_v28 = vadd.f32 %v5846_v20, %v636_v39  ;;  %v5854_v39 = vld [vmem:[#allocation14_spill] sm:$0xff] }
 0x1eb   : > { %v1156_v52 = vpop.f32.mrf.mxu0 }
 0x1ec   : > { %v1157_v18 = vadd.f32 %v1156_v52, %v1097_v50  ;;  %v1648_v2 = vpop.f32.mrf.mxu3  ;;  %v1591_v54 = vpop.f32.mrf.mxu2 }
 0x1ee   : > { %v1216_v27 = vadd.f32 %v1215_v40, %v1157_v18  ;;  %1731 = vmatmul.bf16.gmra.mxu0 %v1382_v8  ;;  %v5848_v8 = vunpack.c.l.bf16 %v5847_v9  ;;  %v1342_v40 = vrot.slane %v5849_v3, 2  ;;  %v1222_v12 = vpop.f32.mrf.mxu1  ;;  %v1649_v9 = vadd.f32 %v1648_v2, %v1589_v21 }
 0x1ef   : > { %1633 = vmatmul.bf16.gmra.mxu2 %v1384_v44  ;;  %v5856_v2 = vunpack.c.l.bf16 %v4683_v45 }
 0x1f0   : > { %v5270_v51 = vadd.f32 %v1216_v27, %v5843_v19  ;;  %v1341_v25 = vrot.slane %v5848_v8, 2  ;;  %v1345_v34 = vsel %vm1290_vm1, %v1342_v40, %v1344_v35 }
 0x1f3   : > { %v1158_v63 = vpop.f32.mrf.mxu0 }
 0x1f4   : > { %v1159_v0 = vadd.f32 %v1158_v63, %v1099_v1  ;;  %v1650_v30 = vpop.f32.mrf.mxu3  ;;  %v1343_v1 = vsel %vm1290_vm1, %v1341_v25, %v1342_v40  ;;  %v1594_v52 = vpop.f32.mrf.mxu2 }
 0x1f5   : > { %v1385_v14 = vpack.c.bf16 %v1345_v34, %v1343_v1  ;;  %v1651_v15 = vadd.f32 %v1650_v30, %v1591_v54  ;;  %v5857_v1 = vunpack.c.h.bf16 %v4683_v45 }
 0x1f6   : > { %v1218_v4 = vadd.f32 %v1217_v23, %v1159_v0  ;;  %v1225_v27 = vpop.f32.mrf.mxu1 }
 0x1f7   : > { %v1347_v34 = vrot.slane %v5857_v1, 2 }
 0x1f8   : > { %v5275_v50 = vadd.f32 %v1218_v4, %v695_v28  ;;  %1692 = vmatmul.bf16.gmra.mxu3 %v1385_v14 }
 0x1fb   : > { %v1161_v7 = vpop.f32.mrf.mxu0 }
 0x1fc   : > { %v1162_v16 = vadd.f32 %v1161_v7, %v5239_v36  ;;  %v1653_v23 = vpop.f32.mrf.mxu3  ;;  %v1346_v7 = vrot.slane %v5856_v2, 2 }
 0x1fe   : > { %v1221_v24 = vadd.f32 %v1220_v47, %v1162_v16  ;;  %1736 = vmatmul.bf16.gmra.mxu0 %v1383_v33  ;;  %v1596_v33 = vpop.f32.mrf.mxu2  ;;  %v1227_v47 = vpop.f32.mrf.mxu1  ;;  %v5858_v16 = vunpack.c.l.bf16 %v5121_v60  ;;  %v1348_v30 = vsel %vm1290_vm1, %v1346_v7, %v1347_v34 }
 0x200   : > { %v5287_v38 = vadd.f32 %v1221_v24, %v5852_v49  ;;  %v1349_v24 = vrot.slane %v5858_v16, 2 }
 0x203   : > { %v1163_v61 = vpop.f32.mrf.mxu0 }
 0x204   : > { %v1164_v11 = vadd.f32 %v1163_v61, %v1104_v58  ;;  %v1655_v5 = vpop.f32.mrf.mxu3  ;;  %v5855_v58 = vld [vmem:[#allocation15_spill] sm:$0xff]  ;;  %v1350_v61 = vsel %vm1290_vm1, %v1347_v34, %v1349_v24 }
 0x205   : > { %v705_v28 = vadd.f32 %v704_v10, %v5855_v58 }
 0x206   : > { %v1223_v59 = vadd.f32 %v1222_v12, %v1164_v11  ;;  %v1599_v25 = vpop.f32.mrf.mxu2  ;;  %v1654_v11 = vadd.f32 %v1653_v23, %v1594_v52  ;;  %v1656_v23 = vadd.f32 %v1655_v5, %v1596_v33 }
 0x208   : > { %v5290_v18 = vadd.f32 %v1223_v59, %v5853_v37  ;;  %v1386_v37 = vpack.c.bf16 %v1350_v61, %v1348_v30 }
 0x20b   : > { %v1166_v19 = vpop.f32.mrf.mxu0 }
 0x20c   : > { %v1167_v36 = vadd.f32 %v1166_v19, %v1107_v56  ;;  %v1658_v3 = vpop.f32.mrf.mxu3 }
 0x20e   : > { %v1226_v26 = vadd.f32 %v1225_v27, %v1167_v36  ;;  %1741 = vmatmul.bf16.gmra.mxu0 %v1384_v44  ;;  %v5301_v44 = vld [vmem:[%s5749_s2] ss:$0 sm:$0xff]  ;;  %v1601_v35 = vpop.f32.mrf.mxu2 }
 0x210   : > { %v5293_v63 = vadd.f32 %v1226_v26, %v5854_v39 }
 0x213   : > { %v1168_v0 = vpop.f32.mrf.mxu0 }
 0x214   : > { %v1169_v20 = vadd.f32 %v1168_v0, %v1109_v22  ;;  %v1660_v12 = vpop.f32.mrf.mxu3 }
 0x215   : > { %v1661_v34 = vadd.f32 %v1660_v12, %v1601_v35 }
 0x216   : > { %v1228_v4 = vadd.f32 %v1227_v47, %v1169_v20  ;;  %v1604_v36 = vpop.f32.mrf.mxu2 }
 0x218   : > { %v5296_v8 = vadd.f32 %v1228_v4, %v705_v28 }
 0x21b   : > { %v1707_v40 = vpop.f32.mrf.mxu0 }
 0x21c   : > { %v1708_v56 = vadd.f32 %v1707_v40, %v1649_v9  ;;  %v1663_v26 = vpop.f32.mrf.mxu3 }
 0x21e   : > { %v1777_v48 = vadd.f32 %v1708_v56, %v5159_v31  ;;  %1746 = vmatmul.bf16.gmra.mxu0 %v1385_v14  ;;  %v1606_v40 = vpop.f32.mrf.mxu2 }
 0x220   : > { %v1841_v22 = vadd.f32 %v5301_v44, %v1777_v48  ;;  %v1659_v48 = vadd.f32 %v1658_v3, %v1599_v25 }
 0x222   : > { %v1861_v10 = vmax.f32 %v1841_v22, 0.0 }
 0x223   : > { %v1709_v21 = vpop.f32.mrf.mxu0 }
 0x224   : > { %v1902_v49 = vrot.slane %v1861_v10, 7  ;;  %v1710_v31 = vadd.f32 %v1709_v21, %v1651_v15  ;;  %v1665_v56 = vpop.f32.mrf.mxu3 }
 0x226   : > { %v1962_v14 = vsel %vm1901_vm2, 0.0, %v1902_v49  ;;  %v1778_v54 = vadd.f32 %v1710_v31, %v5163_v42  ;;  %v1609_v7 = vpop.f32.mrf.mxu2 }
 0x227   : > { %1982 = vst [vmem:[#allocation2] sm:$0xff] %v1962_v14  ;;  %v1664_v14 = vadd.f32 %v1663_v26, %v1604_v36 }
 0x228   : > { %v1842_v59 = vadd.f32 %v5301_v44, %v1778_v54 }
 0x22a   : > { %v1862_v45 = vmax.f32 %v1842_v59, 0.0 }
 0x22b   : > { %v1712_v27 = vpop.f32.mrf.mxu0 }
 0x22c   : > { %v1903_v60 = vrot.slane %v1862_v45, 7  ;;  %v1713_v19 = vadd.f32 %v1712_v27, %v1654_v11  ;;  %v1668_v1 = vpop.f32.mrf.mxu3  ;;  %v1666_v27 = vadd.f32 %v1665_v56, %v1606_v40 }
 0x22e   : > { %v1904_v39 = vsel %vm1901_vm2, %v1902_v49, %v1903_v60  ;;  %v1972_v0 = vsel %vm1901_vm2, %v1903_v60, 0.0  ;;  %v1779_v42 = vadd.f32 %v1713_v19, %v5176_v32  ;;  %1751 = vmatmul.bf16.gmra.mxu0 %v1386_v37  ;;  %v1611_v30 = vpop.f32.mrf.mxu2 }
 0x22f   : > { %1983 = vst [vmem:[#allocation2 + $0x8] sm:$0xff] %v1904_v39 }
 0x230   : > { %1984 = vst [vmem:[#allocation2 + $0x10] sm:$0x3] %v1972_v0  ;;  %v1843_v52 = vadd.f32 %v5301_v44, %v1779_v42 }
 0x232   : > { %v1863_v47 = vmax.f32 %v1843_v52, 0.0 }
 0x233   : > { %v1714_v20 = vpop.f32.mrf.mxu0 }
 0x234   : > { %v1905_v58 = vrot.slane %v1863_v47, 7  ;;  %v1715_v28 = vadd.f32 %v1714_v20, %v1656_v23  ;;  %v1670_v11 = vpop.f32.mrf.mxu3  ;;  %v1669_v23 = vadd.f32 %v1668_v1, %v1609_v7 }
 0x236   : > { %v1963_v4 = vsel %vm1901_vm2, 0.0, %v1905_v58  ;;  %v1780_v9 = vadd.f32 %v1715_v28, %v5180_v55  ;;  %v1614_v39 = vpop.f32.mrf.mxu2 }
 0x237   : > { %1985 = vst [vmem:[#allocation2 + $0x18] sm:$0xff] %v1963_v4 }
 0x238   : > { %v1844_v32 = vadd.f32 %v5301_v44, %v1780_v9 }
 0x23a   : > { %v1864_v22 = vmax.f32 %v1844_v32, 0.0  ;;  %v1671_v32 = vadd.f32 %v1670_v11, %v1611_v30 }
 0x23b   : > { %v1717_v15 = vpop.f32.mrf.mxu0 }
 0x23c   : > { %v1906_v10 = vrot.slane %v1864_v22, 7  ;;  %v1718_v21 = vadd.f32 %v1717_v15, %v1659_v48  ;;  %v1673_v0 = vpop.f32.mrf.mxu3 }
 0x23e   : > { %v1907_v33 = vsel %vm1901_vm2, %v1905_v58, %v1906_v10  ;;  %v1973_v5 = vsel %vm1901_vm2, %v1906_v10, 0.0  ;;  %v1781_v2 = vadd.f32 %v1718_v21, %v5191_v6  ;;  %v1616_v56 = vpop.f32.mrf.mxu2 }
 0x23f   : > { %1986 = vst [vmem:[#allocation2 + $0x20] sm:$0xff] %v1907_v33 }
 0x240   : > { %1987 = vst [vmem:[#allocation2 + $0x28] sm:$0x3] %v1973_v5  ;;  %v1845_v55 = vadd.f32 %v5301_v44, %v1781_v2  ;;  %v1674_v2 = vadd.f32 %v1673_v0, %v1614_v39 }
 0x242   : > { %v1865_v25 = vmax.f32 %v1845_v55, 0.0 }
 0x243   : > { %v1719_v3 = vpop.f32.mrf.mxu0 }
 0x244   : > { %v1908_v16 = vrot.slane %v1865_v25, 7  ;;  %v1720_v24 = vadd.f32 %v1719_v3, %v1661_v34  ;;  %v1675_v48 = vpop.f32.mrf.mxu3 }
 0x246   : > { %v1964_v49 = vsel %vm1901_vm2, 0.0, %v1908_v16  ;;  %v1782_v31 = vadd.f32 %v1720_v24, %v5194_v13 }
 0x247   : > { %1988 = vst [vmem:[#allocation2 + $0x30] sm:$0xff] %v1964_v49 }
 0x248   : > { %v1846_v54 = vadd.f32 %v5301_v44, %v1782_v31  ;;  %v1676_v31 = vadd.f32 %v1675_v48, %v1616_v56 }
 0x24a   : > { %v1866_v6 = vmax.f32 %v1846_v54, 0.0 }
 0x24b   : > { %v1722_v61 = vpop.f32.mrf.mxu0 }
 0x24c   : > { %v1909_v59 = vrot.slane %v1866_v6, 7  ;;  %v1723_v45 = vadd.f32 %v1722_v61, %v1664_v14  ;;  %v1678_v7 = vpop.f32.mrf.mxu3 }
 0x24e   : > { %v1910_v35 = vsel %vm1901_vm2, %v1908_v16, %v1909_v59  ;;  %v1974_v12 = vsel %vm1901_vm2, %v1909_v59, 0.0  ;;  %v1783_v37 = vadd.f32 %v1723_v45, %v5205_v29 }
 0x24f   : > { %1989 = vst [vmem:[#allocation2 + $0x38] sm:$0xff] %v1910_v35 }
 0x250   : > { %1990 = vst [vmem:[#allocation2 + $0x40] sm:$0x3] %v1974_v12  ;;  %v1847_v13 = vadd.f32 %v5301_v44, %v1783_v37 }
 0x252   : > { %v1867_v60 = vmax.f32 %v1847_v13, 0.0 }
 0x253   : > { %v1724_v19 = vpop.f32.mrf.mxu0 }
 0x254   : > { %v1911_v36 = vrot.slane %v1867_v60, 7  ;;  %v1725_v26 = vadd.f32 %v1724_v19, %v1666_v27  ;;  %v1680_v30 = vpop.f32.mrf.mxu3 }
 0x256   : > { %v1965_v42 = vsel %vm1901_vm2, 0.0, %v1911_v36  ;;  %v1784_v52 = vadd.f32 %v1725_v26, %v5210_v17 }
 0x257   : > { %1991 = vst [vmem:[#allocation2 + $0x48] sm:$0xff] %v1965_v42 }
 0x258   : > { %v1848_v47 = vadd.f32 %v5301_v44, %v1784_v52 }
 0x25a   : > { %v1868_v29 = vmax.f32 %v1848_v47, 0.0 }
 0x25b   : > { %v1727_v20 = vpop.f32.mrf.mxu0 }
 0x25c   : > { %v1912_v58 = vrot.slane %v1868_v29, 7  ;;  %v1728_v28 = vadd.f32 %v1727_v20, %v1669_v23  ;;  %v1683_v19 = vpop.f32.mrf.mxu3 }
 0x25e   : > { %v1913_v4 = vsel %vm1901_vm2, %v1911_v36, %v1912_v58  ;;  %v1975_v9 = vsel %vm1901_vm2, %v1912_v58, 0.0  ;;  %v1785_v40 = vadd.f32 %v1728_v28, %v5221_v43  ;;  %v1619_v43 = vpop.f32.mrf.mxu2 }
 0x25f   : > { %1992 = vst [vmem:[#allocation2 + $0x50] sm:$0xff] %v1913_v4  ;;  %v1679_v35 = vadd.f32 %v1678_v7, %v1619_v43 }
 0x260   : > { %1993 = vst [vmem:[#allocation2 + $0x58] sm:$0x3] %v1975_v9  ;;  %v1849_v17 = vadd.f32 %v5301_v44, %v1785_v40 }
 0x262   : > { %v1869_v22 = vmax.f32 %v1849_v17, 0.0 }
 0x263   : > { %v1729_v15 = vpop.f32.mrf.mxu0 }
 0x264   : > { %v1914_v10 = vrot.slane %v1869_v22, 7  ;;  %v1730_v21 = vadd.f32 %v1729_v15, %v1671_v32  ;;  %v1685_v28 = vpop.f32.mrf.mxu3 }
 0x266   : > { %v1966_v33 = vsel %vm1901_vm2, 0.0, %v1914_v10  ;;  %v1786_v5 = vadd.f32 %v1730_v21, %v5226_v41  ;;  %v1621_v54 = vpop.f32.mrf.mxu2 }
 0x267   : > { %1994 = vst [vmem:[#allocation2 + $0x60] sm:$0xff] %v1966_v33  ;;  %v1681_v0 = vadd.f32 %v1680_v30, %v1621_v54 }
 0x268   : > { %v1850_v55 = vadd.f32 %v5301_v44, %v1786_v5 }
 0x26a   : > { %v1870_v1 = vmax.f32 %v1850_v55, 0.0 }
 0x26b   : > { %v1732_v34 = vpop.f32.mrf.mxu0 }
 0x26c   : > { %v1915_v25 = vrot.slane %v1870_v1, 7  ;;  %v1733_v3 = vadd.f32 %v1732_v34, %v1674_v2 }
 0x26e   : > { %v1916_v16 = vsel %vm1901_vm2, %v1914_v10, %v1915_v25  ;;  %v1976_v24 = vsel %vm1901_vm2, %v1915_v25, 0.0  ;;  %v1787_v49 = vadd.f32 %v1733_v3, %v5237_v53  ;;  %v1624_v60 = vpop.f32.mrf.mxu2  ;;  %v1688_v10 = vpop.f32.mrf.mxu3 }
 0x26f   : > { %1995 = vst [vmem:[#allocation2 + $0x68] sm:$0xff] %v1916_v16  ;;  %v1684_v4 = vadd.f32 %v1683_v19, %v1624_v60 }
 0x270   : > { %1996 = vst [vmem:[#allocation2 + $0x70] sm:$0x3] %v1976_v24  ;;  %v1851_v41 = vadd.f32 %v5301_v44, %v1787_v49 }
 0x272   : > { %v1871_v14 = vmax.f32 %v1851_v41, 0.0 }
 0x273   : > { %v1734_v6 = vpop.f32.mrf.mxu0 }
 0x274   : > { %v1917_v61 = vrot.slane %v1871_v14, 7  ;;  %v1735_v11 = vadd.f32 %v1734_v6, %v1676_v31 }
 0x276   : > { %v1967_v59 = vsel %vm1901_vm2, 0.0, %v1917_v61  ;;  %v1788_v45 = vadd.f32 %v1735_v11, %v5243_v62  ;;  %v1626_v58 = vpop.f32.mrf.mxu2  ;;  %v1690_v3 = vpop.f32.mrf.mxu3 }
 0x277   : > { %1997 = vst [vmem:[#allocation2 + $0x78] sm:$0xff] %v1967_v59  ;;  %v1686_v21 = vadd.f32 %v1685_v28, %v1626_v58 }
 0x278   : > { %v1852_v12 = vadd.f32 %v5301_v44, %v1788_v45 }
 0x27a   : > { %v1872_v53 = vmax.f32 %v1852_v12, 0.0 }
 0x27b   : > { %v1737_v37 = vpop.f32.mrf.mxu0 }
 0x27c   : > { %v1918_v13 = vrot.slane %v1872_v53, 7  ;;  %v1738_v27 = vadd.f32 %v1737_v37, %v1679_v35 }
 0x27e   : > { %v1919_v36 = vsel %vm1901_vm2, %v1917_v61, %v1918_v13  ;;  %v1977_v26 = vsel %vm1901_vm2, %v1918_v13, 0.0  ;;  %v1789_v39 = vadd.f32 %v1738_v27, %v5254_v46  ;;  %v1629_v15 = vpop.f32.mrf.mxu2  ;;  %v1693_v45 = vpop.f32.mrf.mxu3 }
 0x27f   : > { %1998 = vst [vmem:[#allocation2 + $0x80] sm:$0xff] %v1919_v36  ;;  %v1689_v1 = vadd.f32 %v1688_v10, %v1629_v15 }
 0x280   : > { %1999 = vst [vmem:[#allocation2 + $0x88] sm:$0x3] %v1977_v26  ;;  %v1853_v62 = vadd.f32 %v5301_v44, %v1789_v39 }
 0x282   : > { %v1873_v42 = vmax.f32 %v1853_v62, 0.0 }
 0x283   : > { %v1739_v52 = vpop.f32.mrf.mxu0 }
 0x284   : > { %v1920_v23 = vrot.slane %v1873_v42, 7  ;;  %v1740_v47 = vadd.f32 %v1739_v52, %v1681_v0 }
 0x286   : > { %v1968_v29 = vsel %vm1901_vm2, 0.0, %v1920_v23  ;;  %v1790_v20 = vadd.f32 %v1740_v47, %v5259_v57  ;;  %v1631_v25 = vpop.f32.mrf.mxu2  ;;  %v1695_v62 = vpop.f32.mrf.mxu3 }
 0x287   : > { %2000 = vst [vmem:[#allocation2 + $0x90] sm:$0xff] %v1968_v29  ;;  %v1691_v54 = vadd.f32 %v1690_v3, %v1631_v25 }
 0x288   : > { %v1854_v9 = vadd.f32 %v5301_v44, %v1790_v20 }
 0x28a   : > { %v1874_v46 = vmax.f32 %v1854_v9, 0.0 }
 0x28b   : > { %v1742_v40 = vpop.f32.mrf.mxu0 }
 0x28c   : > { %v1921_v56 = vrot.slane %v1874_v46, 7  ;;  %v1743_v48 = vadd.f32 %v1742_v40, %v1684_v4 }
 0x28e   : > { %v1922_v17 = vsel %vm1901_vm2, %v1920_v23, %v1921_v56  ;;  %v1978_v32 = vsel %vm1901_vm2, %v1921_v56, 0.0  ;;  %v1791_v22 = vadd.f32 %v1743_v48, %v5270_v51  ;;  %v1634_v59 = vpop.f32.mrf.mxu2 }
 0x28f   : > { %2001 = vst [vmem:[#allocation2 + $0x98] sm:$0xff] %v1922_v17  ;;  %v1694_v53 = vadd.f32 %v1693_v45, %v1634_v59 }
 0x290   : > { %2002 = vst [vmem:[#allocation2 + $0xa0] sm:$0x3] %v1978_v32  ;;  %v1855_v57 = vadd.f32 %v5301_v44, %v1791_v22 }
 0x292   : > { %v1875_v33 = vmax.f32 %v1855_v57, 0.0 }
 0x293   : > { %v1744_v5 = vpop.f32.mrf.mxu0 }
 0x294   : > { %v1923_v2 = vrot.slane %v1875_v33, 7  ;;  %v1745_v55 = vadd.f32 %v1744_v5, %v1686_v21 }
 0x296   : > { %v1969_v43 = vsel %vm1901_vm2, 0.0, %v1923_v2  ;;  %v1792_v7 = vadd.f32 %v1745_v55, %v5275_v50  ;;  %v1636_v39 = vpop.f32.mrf.mxu2 }
 0x297   : > { %2003 = vst [vmem:[#allocation2 + $0xa8] sm:$0xff] %v1969_v43  ;;  %v1696_v0 = vadd.f32 %v1695_v62, %v1636_v39 }
 0x298   : > { %v1856_v34 = vadd.f32 %v5301_v44, %v1792_v7 }
 0x29a   : > { %v1876_v51 = vmax.f32 %v1856_v34, 0.0 }
 0x29b   : > { %v1747_v16 = vpop.f32.mrf.mxu0 }
 0x29c   : > { %v1924_v24 = vrot.slane %v1876_v51, 7  ;;  %v1748_v49 = vadd.f32 %v1747_v16, %v1689_v1 }
 0x29e   : > { %v1925_v41 = vsel %vm1901_vm2, %v1923_v2, %v1924_v24  ;;  %v1979_v31 = vsel %vm1901_vm2, %v1924_v24, 0.0  ;;  %v1793_v14 = vadd.f32 %v1748_v49, %v5287_v38 }
 0x29f   : > { %2004 = vst [vmem:[#allocation2 + $0xb0] sm:$0xff] %v1925_v41 }
 0x2a0   : > { %2005 = vst [vmem:[#allocation2 + $0xb8] sm:$0x3] %v1979_v31  ;;  %v1857_v50 = vadd.f32 %v5301_v44, %v1793_v14 }
 0x2a2   : > { %v1877_v6 = vmax.f32 %v1857_v50, 0.0 }
 0x2a3   : > { %v1749_v30 = vpop.f32.mrf.mxu0 }
 0x2a4   : > { %v1926_v61 = vrot.slane %v1877_v6, 7  ;;  %v1750_v11 = vadd.f32 %v1749_v30, %v1691_v54 }
 0x2a6   : > { %v1970_v35 = vsel %vm1901_vm2, 0.0, %v1926_v61  ;;  %v1794_v12 = vadd.f32 %v1750_v11, %v5290_v18 }
 0x2a7   : > { %2006 = vst [vmem:[#allocation2 + $0xc0] sm:$0xff] %v1970_v35 }
 0x2a8   : > { %v1858_v37 = vadd.f32 %v5301_v44, %v1794_v12 }
 0x2aa   : > { %v1878_v38 = vmax.f32 %v1858_v37, 0.0 }
 0x2ab   : > { %v1752_v13 = vpop.f32.mrf.mxu0 }
 0x2ac   : > { %v1927_v27 = vrot.slane %v1878_v38, 7  ;;  %v1753_v60 = vadd.f32 %v1752_v13, %v1694_v53 }
 0x2ae   : > { %v1928_v19 = vsel %vm1901_vm2, %v1926_v61, %v1927_v27  ;;  %v1980_v36 = vsel %vm1901_vm2, %v1927_v27, 0.0  ;;  %v1795_v26 = vadd.f32 %v1753_v60, %v5293_v63 }
 0x2af   : > { %2007 = vst [vmem:[#allocation2 + $0xc8] sm:$0xff] %v1928_v19 }
 0x2b0   : > { %2008 = vst [vmem:[#allocation2 + $0xd0] sm:$0x3] %v1980_v36  ;;  %v1859_v18 = vadd.f32 %v5301_v44, %v1795_v26 }
 0x2b2   : > { %v1879_v42 = vmax.f32 %v1859_v18, 0.0 }
 0x2b3   : > { %v1754_v52 = vpop.f32.mrf.mxu0 }
 0x2b4   : > { %v1929_v23 = vrot.slane %v1879_v42, 7  ;;  %v1755_v47 = vadd.f32 %v1754_v52, %v1696_v0 }
 0x2b6   : > { %v1971_v29 = vsel %vm1901_vm2, 0.0, %v1929_v23  ;;  %v1796_v20 = vadd.f32 %v1755_v47, %v5296_v8 }
 0x2b7   : > { %2009 = vst [vmem:[#allocation2 + $0xd8] sm:$0xff] %v1971_v29 }
 0x2b8   : > { %v1860_v58 = vadd.f32 %v5301_v44, %v1796_v20 }
 0x2ba   : > { %v1880_v28 = vmax.f32 %v1860_v58, 0.0 }
 0x2bc   : > { %v1930_v63 = vrot.slane %v1880_v28, 7  ;;  %2015 = sbr.rel (%p3805_p7) target bundleno = 709 (0x2c5), region = 44 }
 0x2be   : > { %v1931_v4 = vsel %vm1901_vm2, %v1929_v23, %v1930_v63  ;;  %v1981_v9 = vsel %vm1901_vm2, %v1930_v63, 0.0 }
 0x2bf   : > { %2010 = vst [vmem:[#allocation2 + $0xe0] sm:$0xff] %v1931_v4 }
 0x2c0   : > { %2011 = vst [vmem:[#allocation2 + $0xe8] sm:$0x3] %v1981_v9 }
 0x2c1   : > { %v4468_v46 = vmov 0.0  }
 0x2c2   : > { %2016 = vst [vmem:[#allocation2] sm:$0xff] %v4468_v46 }
 0x2c3   : > { %2017 = vst [vmem:[#allocation2 + $0x8] sm:$0xff] %v4468_v46 }
 0x2c4   : > { %2018 = vst [vmem:[#allocation2 + $0x10] sm:$0x3] %v4468_v46 }
 0x2c5 PF: > { %p3806_p8 = scmp.ne.s32.totalorder %s4450_s18, 1 }
 0x2c7   : > { %2022 = sbr.rel (%p3806_p8) target bundleno = 720 (0x2d0), region = 48 }
 0x2cc   : > { %v4469_v8 = vmov 0.0  }
 0x2cd   : > { %2024 = vst [vmem:[#allocation2 + $0xd8] sm:$0xff] %v4469_v8 }
 0x2ce   : > { %2025 = vst [vmem:[#allocation2 + $0xe0] sm:$0xff] %v4469_v8 }
 0x2cf   : > { %2026 = vst [vmem:[#allocation2 + $0xe8] sm:$0x3] %v4469_v8 }
 0x2d0 PF: > { %v4273_v44 = vld [vmem:[%s5750_s3 + $0x38] sm:$0xff]  ;;  %v4272_v48 = vld [vmem:[%s5750_s3 + $0x30] sm:$0xff]  ;;  %v4271_v22 = vld [vmem:[%s5750_s3 + $0x28] sm:$0xff] }
 0x2d1   : > { %v4281_v40 = vld [vmem:[%s5750_s3 + $0x78] sm:$0xff]  ;;  %2249 = vmatpush.bf16.msra.mxu1 %v4273_v44  ;;  %v4280_v17 = vld [vmem:[%s5750_s3 + $0x70] sm:$0xff]  ;;  %v4279_v57 = vld [vmem:[%s5750_s3 + $0x68] sm:$0xff] }
 0x2d2   : > { %v4289_v56 = vld [vmem:[%s5750_s3 + $0xb8] sm:$0xff]  ;;  %2298 = vmatpush.bf16.msra.mxu2 %v4281_v40  ;;  %v4288_v32 = vld [vmem:[%s5750_s3 + $0xb0] sm:$0xff]  ;;  %v4287_v15 = vld [vmem:[%s5750_s3 + $0xa8] sm:$0xff] }
 0x2d3   : > { %2347 = vmatpush.bf16.msrb.mxu3 %v4289_v56  ;;  %v4270_v10 = vld [vmem:[%s5750_s3 + $0x20] sm:$0xff]  ;;  %v4269_v5 = vld [vmem:[%s5750_s3 + $0x18] sm:$0xff]  ;;  %v4268_v43 = vld [vmem:[%s5750_s3 + $0x10] sm:$0xff] }
 0x2d4   : > { %v4278_v21 = vld [vmem:[%s5750_s3 + $0x60] sm:$0xff]  ;;  %v4277_v2 = vld [vmem:[%s5750_s3 + $0x58] sm:$0xff]  ;;  %v4276_v7 = vld [vmem:[%s5750_s3 + $0x50] sm:$0xff] }
 0x2d5   : > { %2250 = vmatpush.bf16.msra.mxu1 %v4272_v48  ;;  %v4286_v33 = vld [vmem:[%s5750_s3 + $0xa0] sm:$0xff]  ;;  %v4285_v55 = vld [vmem:[%s5750_s3 + $0x98] sm:$0xff]  ;;  %v4284_v1 = vld [vmem:[%s5750_s3 + $0x90] sm:$0xff] }
 0x2d6   : > { %2299 = vmatpush.bf16.msra.mxu2 %v4280_v17  ;;  %v4267_v34 = vld [vmem:[%s5750_s3 + $0x8] sm:$0xff]  ;;  %v4266_v3 = vld [vmem:[%s5750_s3] sm:$0xff]  ;;  %v2029_v31 = vld [vmem:[#allocation2 + $0x18] sm:$0xff] }
 0x2d7   : > { %2348 = vmatpush.bf16.msrb.mxu3 %v4288_v32  ;;  %v4275_v51 = vld [vmem:[%s5750_s3 + $0x48] sm:$0xff]  ;;  %v4274_v16 = vld [vmem:[%s5750_s3 + $0x40] sm:$0xff]  ;;  %v4305_v50 = vld [vmem:[%s5750_s3 + $0x138] sm:$0xff] }
 0x2d8   : > { %v4283_v25 = vld [vmem:[%s5750_s3 + $0x88] sm:$0xff]  ;;  %v4282_v24 = vld [vmem:[%s5750_s3 + $0x80] sm:$0xff]  ;;  %v2031_v54 = vld [vmem:[#allocation2 + $0x30] sm:$0xff] }
 0x2d9   : > { %2251 = vmatpush.bf16.msra.mxu1 %v4271_v22  ;;  %v2027_v49 = vld [vmem:[#allocation2] sm:$0xff]  ;;  %v2028_v41 = vld [vmem:[#allocation2 + $0x8] sm:$0xff]  ;;  %v2032_v6 = vld [vmem:[#allocation2 + $0x38] sm:$0xff] }
 0x2da   : > { %2300 = vmatpush.bf16.msra.mxu2 %v4279_v57  ;;  %v2030_v14 = vld [vmem:[#allocation2 + $0x20] sm:$0xff]  ;;  %v4297_v30 = vld [vmem:[%s5750_s3 + $0xf8] sm:$0xff]  ;;  %v2047_v61 = vpack.c.bf16 %v2028_v41, %v2027_v49  ;;  %v2049_v59 = vpack.c.bf16 %v2032_v6, %v2031_v54  ;;  %v4304_v45 = vld [vmem:[%s5750_s3 + $0x130] sm:$0xff] }
 0x2db   : > { %2349 = vmatpush.bf16.msrb.mxu3 %v4287_v15  ;;  %v2048_v11 = vpack.c.bf16 %v2030_v14, %v2029_v31  ;;  %v4296_v35 = vld [vmem:[%s5750_s3 + $0xf0] sm:$0xff]  ;;  %v4303_v12 = vld [vmem:[%s5750_s3 + $0x128] sm:$0xff]  ;;  %v4302_v27 = vld [vmem:[%s5750_s3 + $0x120] sm:$0xff] }
 0x2dc   : > { %v4295_v53 = vld [vmem:[%s5750_s3 + $0xe8] sm:$0xff]  ;;  %v2034_v38 = vld [vmem:[#allocation2 + $0x50] sm:$0xff]  ;;  %v4294_v60 = vld [vmem:[%s5750_s3 + $0xe0] sm:$0xff] }
 0x2dd   : > { %2252 = vmatpush.bf16.msra.mxu1 %v4270_v10  ;;  %v2033_v37 = vld [vmem:[#allocation2 + $0x48] sm:$0xff]  ;;  %v2035_v19 = vld [vmem:[#allocation2 + $0x60] sm:$0xff]  ;;  %v4301_v39 = vld [vmem:[%s5750_s3 + $0x118] sm:$0xff] }
 0x2de   : > { %2301 = vmatpush.bf16.msra.mxu2 %v4278_v21  ;;  %v2050_v13 = vpack.c.bf16 %v2034_v38, %v2033_v37  ;;  %v2036_v36 = vld [vmem:[#allocation2 + $0x68] sm:$0xff]  ;;  %v4293_v62 = vld [vmem:[%s5750_s3 + $0xd8] sm:$0xff]  ;;  %v2038_v0 = vld [vmem:[#allocation2 + $0x80] sm:$0xff] }
 0x2df   : > { %2350 = vmatpush.bf16.msrb.mxu3 %v4286_v33  ;;  %v2051_v26 = vpack.c.bf16 %v2036_v36, %v2035_v19  ;;  %v2037_v18 = vld [vmem:[#allocation2 + $0x78] sm:$0xff]  ;;  %v4300_v52 = vld [vmem:[%s5750_s3 + $0x110] sm:$0xff]  ;;  %v4299_v58 = vld [vmem:[%s5750_s3 + $0x108] sm:$0xff] }
 0x2e0   : > { %v2052_v42 = vpack.c.bf16 %v2038_v0, %v2037_v18  ;;  %v4292_v23 = vld [vmem:[%s5750_s3 + $0xd0] sm:$0xff]  ;;  %v2040_v29 = vld [vmem:[#allocation2 + $0x98] sm:$0xff]  ;;  %v4291_v63 = vld [vmem:[%s5750_s3 + $0xc8] sm:$0xff] }
 0x2e1   : > { %2253 = vmatpush.bf16.msra.mxu1 %v4269_v5  ;;  %v2039_v47 = vld [vmem:[#allocation2 + $0x90] sm:$0xff]  ;;  %v4313_v28 = vld [vmem:[%s5750_s3 + $0x178] sm:$0xff]  ;;  %v4311_v9 = vld [vmem:[%s5750_s3 + $0x168] sm:$0xff] }
 0x2e2   : > { %2302 = vmatpush.bf16.msra.mxu2 %v4277_v2  ;;  %v2053_v20 = vpack.c.bf16 %v2040_v29, %v2039_v47  ;;  %v4312_v4 = vld [vmem:[%s5750_s3 + $0x170] sm:$0xff]  ;;  %v2041_v46 = vld [vmem:[#allocation2 + $0xa8] sm:$0xff]  ;;  %v4310_v44 = vld [vmem:[%s5750_s3 + $0x160] sm:$0xff] }
 0x2e3   : > { %2351 = vmatpush.bf16.msrb.mxu3 %v4285_v55  ;;  %v2042_v8 = vld [vmem:[#allocation2 + $0xb0] sm:$0xff]  ;;  %v4298_v56 = vld [vmem:[%s5750_s3 + $0x100] sm:$0xff]  ;;  %v4309_v48 = vld [vmem:[%s5750_s3 + $0x158] sm:$0xff] }
 0x2e4   : > { %v2054_v40 = vpack.c.bf16 %v2042_v8, %v2041_v46  ;;  %v4290_v17 = vld [vmem:[%s5750_s3 + $0xc0] sm:$0xff]  ;;  %v4308_v32 = vld [vmem:[%s5750_s3 + $0x150] sm:$0xff]  ;;  %v4307_v22 = vld [vmem:[%s5750_s3 + $0x148] sm:$0xff] }
 0x2e5   : > { %2254 = vmatpush.bf16.msra.mxu1 %v4268_v43  ;;  %v2043_v57 = vld [vmem:[#allocation2 + $0xc0] sm:$0xff]  ;;  %v2044_v15 = vld [vmem:[#allocation2 + $0xc8] sm:$0xff]  ;;  %v4337_v33 = vld [vmem:[%s5750_s3 + $0x238] sm:$0xff] }
 0x2e6   : > { %2303 = vmatpush.bf16.msra.mxu2 %v4276_v7  ;;  %v2055_v10 = vpack.c.bf16 %v2044_v15, %v2043_v57  ;;  %v4306_v21 = vld [vmem:[%s5750_s3 + $0x140] sm:$0xff]  ;;  %v4329_v5 = vld [vmem:[%s5750_s3 + $0x1f8] sm:$0xff]  ;;  %v4336_v7 = vld [vmem:[%s5750_s3 + $0x230] sm:$0xff] }
 0x2e7   : > { %2352 = vmatpush.bf16.msrb.mxu3 %v4284_v1  ;;  %v2045_v2 = vld [vmem:[#allocation2 + $0xd8] sm:$0xff]  ;;  %v2046_v55 = vld [vmem:[#allocation2 + $0xe0] sm:$0xff]  ;;  %v4328_v1 = vld [vmem:[%s5750_s3 + $0x1f0] sm:$0xff] }
 0x2e8   : > { %v2056_v43 = vpack.c.bf16 %v2046_v55, %v2045_v2  ;;  %v2420_v0 = vld [vmem:[#allocation2 + $0x61] sm:$0xff]  ;;  %v4325_v46 = vld [vmem:[%s5750_s3 + $0x1d8] sm:$0xff]  ;;  %v4324_v2 = vld [vmem:[%s5750_s3 + $0x1d0] sm:$0xff] }
 0x2e9   : > { %2255 = vmatpush.bf16.msra.mxu1 %v4267_v34  ;;  %v2412_v34 = vld [vmem:[#allocation2 + $0x1] sm:$0xff] }
 0x2ea   : > { %2304 = vmatpush.bf16.msra.mxu2 %v4275_v51  ;;  %v2413_v51 = vld [vmem:[#allocation2 + $0x9] sm:$0xff] }
 0x2eb   : > { %2353 = vmatpush.bf16.msrb.mxu3 %v4283_v25  ;;  %v2414_v25 = vld [vmem:[#allocation2 + $0x19] sm:$0xff]  ;;  %v2432_v49 = vpack.c.bf16 %v2413_v51, %v2412_v34 }
 0x2ec   : > { %v4321_v51 = vld [vmem:[%s5750_s3 + $0x1b8] sm:$0xff] }
 0x2ed   : > { %2256 = vmatpush.bf16.msra.mxu1 %v4266_v3  ;;  %v2415_v3 = vld [vmem:[#allocation2 + $0x21] sm:$0xff]  ;;  %3053 = vmatpush.bf16.msra.mxu0 %v4321_v51 }
 0x2ee   : > { %2305 = vmatpush.bf16.msra.mxu2 %v4274_v16  ;;  %v2416_v16 = vld [vmem:[#allocation2 + $0x31] sm:$0xff]  ;;  %v2433_v41 = vpack.c.bf16 %v2415_v3, %v2414_v25 }
 0x2ef   : > { %2354 = vmatpush.bf16.msrb.mxu3 %v4282_v24  ;;  %v2417_v24 = vld [vmem:[#allocation2 + $0x39] sm:$0xff] }
 0x2f0   : > { %2257 = vmatmul.bf16.vlgmr.msra.gmra.mxu1 %v2047_v61  ;;  %v2434_v14 = vpack.c.bf16 %v2417_v24, %v2416_v16  ;;  %v4327_v61 = vld [vmem:[%s5750_s3 + $0x1e8] sm:$0xff] }
 0x2f1   : > { %2635 = vmatpush.bf16.msrb.mxu1 %v4297_v30  ;;  %2306 = vmatmul.bf16.vlgmr.msra.gmra.mxu2 %v2048_v11 }
 0x2f2   : > { %2684 = vmatpush.bf16.msrb.mxu2 %v4305_v50  ;;  %2355 = vmatmul.bf16.vlgmr.msrb.gmra.mxu3 %v2049_v59  ;;  %v4335_v50 = vld [vmem:[%s5750_s3 + $0x228] sm:$0xff] }
 0x2f3   : > { %2733 = vmatpush.bf16.msra.mxu3 %v4313_v28  ;;  %v4333_v28 = vld [vmem:[%s5750_s3 + $0x218] sm:$0xff] }
 0x2f5   : > { %2636 = vmatpush.bf16.msrb.mxu1 %v4296_v35  ;;  %v2419_v35 = vld [vmem:[#allocation2 + $0x51] sm:$0xff] }
 0x2f6   : > { %2685 = vmatpush.bf16.msrb.mxu2 %v4304_v45  ;;  %v2418_v45 = vld [vmem:[#allocation2 + $0x49] sm:$0xff] }
 0x2f7   : > { %2734 = vmatpush.bf16.msra.mxu3 %v4312_v4 }
 0x2f9   : > { %2637 = vmatpush.bf16.msrb.mxu1 %v4295_v53 }
 0x2fa   : > { %2686 = vmatpush.bf16.msrb.mxu2 %v4303_v12 }
 0x2fb   : > { %2735 = vmatpush.bf16.msra.mxu3 %v4311_v9 }
 0x2fd   : > { %2638 = vmatpush.bf16.msrb.mxu1 %v4294_v60  ;;  %v4334_v60 = vld [vmem:[%s5750_s3 + $0x220] sm:$0xff] }
 0x2fe   : > { %2687 = vmatpush.bf16.msrb.mxu2 %v4302_v27 }
 0x2ff   : > { %2736 = vmatpush.bf16.msra.mxu3 %v4310_v44 }
 0x300   : > { %2262 = vmatmul.bf16.gmra.mxu1 %v2048_v11 }
 0x301   : > { %2311 = vmatmul.bf16.gmra.mxu2 %v2049_v59  ;;  %2639 = vmatpush.bf16.msrb.mxu1 %v4293_v62 }
 0x302   : > { %2360 = vmatmul.bf16.gmra.mxu3 %v2050_v13  ;;  %2688 = vmatpush.bf16.msrb.mxu2 %v4301_v39  ;;  %v4326_v39 = vld [vmem:[%s5750_s3 + $0x1e0] sm:$0xff] }
 0x303   : > { %2737 = vmatpush.bf16.msra.mxu3 %v4309_v48 }
 0x305   : > { %2640 = vmatpush.bf16.msrb.mxu1 %v4292_v23 }
 0x306   : > { %2689 = vmatpush.bf16.msrb.mxu2 %v4300_v52 }
 0x307   : > { %2738 = vmatpush.bf16.msra.mxu3 %v4308_v32 }
 0x309   : > { %2641 = vmatpush.bf16.msrb.mxu1 %v4291_v63 }
 0x30a   : > { %2690 = vmatpush.bf16.msrb.mxu2 %v4299_v58 }
 0x30b   : > { %2739 = vmatpush.bf16.msra.mxu3 %v4307_v22 }
 0x30d   : > { %2642 = vmatpush.bf16.msrb.mxu1 %v4290_v17 }
 0x30e   : > { %2691 = vmatpush.bf16.msrb.mxu2 %v4298_v56  ;;  %v2423_v56 = vld [vmem:[#allocation2 + $0x81] sm:$0xff] }
 0x30f   : > { %2740 = vmatpush.bf16.msra.mxu3 %v4306_v21 }
 0x310   : > { %2267 = vmatmul.bf16.gmra.mxu1 %v2049_v59 }
 0x311   : > { %2316 = vmatmul.bf16.gmra.mxu2 %v2050_v13  ;;  %3102 = vmatpush.bf16.msra.mxu1 %v4329_v5 }
 0x312   : > { %2365 = vmatmul.bf16.gmra.mxu3 %v2051_v26  ;;  %3151 = vmatpush.bf16.msra.mxu2 %v4337_v33 }
 0x315   : > { %3103 = vmatpush.bf16.msra.mxu1 %v4328_v1  ;;  %v2425_v1 = vld [vmem:[#allocation2 + $0x99] sm:$0xff] }
 0x316   : > { %3152 = vmatpush.bf16.msra.mxu2 %v4336_v7  ;;  %v2424_v7 = vld [vmem:[#allocation2 + $0x91] sm:$0xff] }
 0x317   : > { %v2438_v24 = vpack.c.bf16 %v2425_v1, %v2424_v7  ;;  %v2431_v7 = vld [vmem:[#allocation2 + $0xe1] sm:$0xff] }
 0x319   : > { %3104 = vmatpush.bf16.msra.mxu1 %v4327_v61 }
 0x31a   : > { %3153 = vmatpush.bf16.msra.mxu2 %v4335_v50  ;;  %v4319_v50 = vld [vmem:[%s5750_s3 + $0x1a8] sm:$0xff] }
 0x31d   : > { %3105 = vmatpush.bf16.msra.mxu1 %v4326_v39  ;;  %v4330_v39 = vld [vmem:[%s5750_s3 + $0x200] sm:$0xff] }
 0x31e   : > { %3154 = vmatpush.bf16.msra.mxu2 %v4334_v60 }
 0x320   : > { %2272 = vmatmul.bf16.gmra.mxu1 %v2050_v13  ;;  %v2435_v13 = vpack.c.bf16 %v2419_v35, %v2418_v45  ;;  %v4318_v45 = vld [vmem:[%s5750_s3 + $0x1a0] sm:$0xff]  ;;  %v2426_v35 = vld [vmem:[#allocation2 + $0xa9] sm:$0xff] }
 0x321   : > { %2321 = vmatmul.bf16.gmra.mxu2 %v2051_v26  ;;  %3106 = vmatpush.bf16.msra.mxu1 %v4325_v46 }
 0x322   : > { %2370 = vmatmul.bf16.gmra.mxu3 %v2052_v42  ;;  %3155 = vmatpush.bf16.msra.mxu2 %v4333_v28  ;;  %v2830_v28 = vld [vmem:[#allocation2 + $0x2] sm:$0xff] }
 0x325   : > { %3107 = vmatpush.bf16.msra.mxu1 %v4324_v2  ;;  %v2833_v2 = vld [vmem:[#allocation2 + $0x22] sm:$0xff] }
 0x330   : > { %2277 = vmatmul.bf16.gmra.mxu1 %v2051_v26 }
 0x331   : > { %2326 = vmatmul.bf16.gmra.mxu2 %v2052_v42 }
 0x332   : > { %2375 = vmatmul.bf16.gmra.mxu3 %v2053_v20 }
 0x340   : > { %2282 = vmatmul.bf16.gmra.mxu1 %v2052_v42  ;;  %v2421_v42 = vld [vmem:[#allocation2 + $0x69] sm:$0xff] }
 0x341   : > { %2331 = vmatmul.bf16.gmra.mxu2 %v2053_v20 }
 0x342   : > { %2380 = vmatmul.bf16.gmra.mxu3 %v2054_v40 }
 0x350   : > { %2287 = vmatmul.bf16.gmra.mxu1 %v2053_v20  ;;  %v2436_v20 = vpack.c.bf16 %v2421_v42, %v2420_v0  ;;  %v4315_v0 = vld [vmem:[%s5750_s3 + $0x188] sm:$0xff] }
 0x351   : > { %2336 = vmatmul.bf16.gmra.mxu2 %v2054_v40 }
 0x352   : > { %2385 = vmatmul.bf16.gmra.mxu3 %v2055_v10 }
 0x360   : > { %2292 = vmatmul.bf16.gmra.mxu1 %v2054_v40  ;;  %v2422_v40 = vld [vmem:[#allocation2 + $0x79] sm:$0xff] }
 0x361   : > { %2341 = vmatmul.bf16.gmra.mxu2 %v2055_v10  ;;  %v2437_v57 = vpack.c.bf16 %v2423_v56, %v2422_v40  ;;  %v4332_v10 = vld [vmem:[%s5750_s3 + $0x210] sm:$0xff] }
 0x362   : > { %2390 = vmatmul.bf16.gmra.mxu3 %v2056_v43  ;;  %3156 = vmatpush.bf16.msra.mxu2 %v4332_v10 }
 0x36d   : > { %v2258_v31 = vpop.f32.mrf.mxu1 }
 0x370   : > { %2643 = vmatmul.bf16.vlgmr.msrb.gmra.mxu1 %v2432_v49 }
 0x371   : > { %2692 = vmatmul.bf16.vlgmr.msrb.gmra.mxu2 %v2433_v41 }
 0x372   : > { %2741 = vmatmul.bf16.vlgmr.msra.gmra.mxu3 %v2434_v14 }
 0x374   : > { %v2307_v54 = vpop.f32.mrf.mxu2 }
 0x375   : > { %v2308_v6 = vadd.f32 %v2307_v54, %v2258_v31  ;;  %v2356_v30 = vpop.f32.mrf.mxu3  ;;  %v2260_v11 = vpop.f32.mrf.mxu1  ;;  %v4331_v31 = vld [vmem:[%s5750_s3 + $0x208] sm:$0xff] }
 0x376   : > { %3157 = vmatpush.bf16.msra.mxu2 %v4331_v31 }
 0x377   : > { %v5545_v59 = vadd.f32 %v2356_v30, %v2308_v6  ;;  %v4323_v30 = vld [vmem:[%s5750_s3 + $0x1c8] sm:$0xff] }
 0x378   : > { %3108 = vmatpush.bf16.msra.mxu1 %v4323_v30  ;;  %v2835_v30 = vld [vmem:[#allocation2 + $0x3a] sm:$0xff] }
 0x37a   : > { %3158 = vmatpush.bf16.msra.mxu2 %v4330_v39  ;;  %v2836_v39 = vld [vmem:[#allocation2 + $0x4a] sm:$0xff] }
 0x37c   : > { %v2309_v12 = vpop.f32.mrf.mxu2 }
 0x37d   : > { %v2310_v53 = vadd.f32 %v2309_v12, %v2260_v11  ;;  %v2358_v37 = vpop.f32.mrf.mxu3  ;;  %v2263_v38 = vpop.f32.mrf.mxu1  ;;  %v2427_v12 = vld [vmem:[#allocation2 + $0xb1] sm:$0xff] }
 0x37f   : > { %v5547_v27 = vadd.f32 %v2358_v37, %v2310_v53  ;;  %v4317_v37 = vld [vmem:[%s5750_s3 + $0x198] sm:$0xff] }
 0x380   : > { %2648 = vmatmul.bf16.gmra.mxu1 %v2433_v41  ;;  %v4320_v41 = vld [vmem:[%s5750_s3 + $0x1b0] sm:$0xff] }
 0x381   : > { %2697 = vmatmul.bf16.gmra.mxu2 %v2434_v14  ;;  %3054 = vmatpush.bf16.msra.mxu0 %v4320_v41 }
 0x382   : > { %2746 = vmatmul.bf16.gmra.mxu3 %v2435_v13 }
 0x384   : > { %v2312_v19 = vpop.f32.mrf.mxu2 }
 0x385   : > { %v2313_v36 = vadd.f32 %v2312_v19, %v2263_v38  ;;  %v2361_v26 = vpop.f32.mrf.mxu3  ;;  %v2265_v62 = vpop.f32.mrf.mxu1  ;;  %3055 = vmatpush.bf16.msra.mxu0 %v4319_v50  ;;  %v2439_v19 = vpack.c.bf16 %v2427_v12, %v2426_v35 }
 0x387   : > { %v5555_v18 = vadd.f32 %v2361_v26, %v2313_v36  ;;  %v4316_v26 = vld [vmem:[%s5750_s3 + $0x190] sm:$0xff] }
 0x389   : > { %3056 = vmatpush.bf16.msra.mxu0 %v4318_v45 }
 0x38c   : > { %v2314_v52 = vpop.f32.mrf.mxu2 }
 0x38d   : > { %v2315_v23 = vadd.f32 %v2314_v52, %v2265_v62  ;;  %v2363_v47 = vpop.f32.mrf.mxu3  ;;  %v2268_v29 = vpop.f32.mrf.mxu1  ;;  %3057 = vmatpush.bf16.msra.mxu0 %v4317_v37 }
 0x38f   : > { %v5557_v58 = vadd.f32 %v2363_v47, %v2315_v23  ;;  %v4322_v23 = vld [vmem:[%s5750_s3 + $0x1c0] sm:$0xff] }
 0x390   : > { %2653 = vmatmul.bf16.gmra.mxu1 %v2434_v14 }
 0x391   : > { %2702 = vmatmul.bf16.gmra.mxu2 %v2435_v13  ;;  %3058 = vmatpush.bf16.msra.mxu0 %v4316_v26 }
 0x392   : > { %2751 = vmatmul.bf16.gmra.mxu3 %v2436_v20  ;;  %3109 = vmatpush.bf16.msra.mxu1 %v4322_v23 }
 0x394   : > { %v2317_v63 = vpop.f32.mrf.mxu2 }
 0x395   : > { %v2318_v4 = vadd.f32 %v2317_v63, %v2268_v29  ;;  %v2366_v9 = vpop.f32.mrf.mxu3  ;;  %v2270_v8 = vpop.f32.mrf.mxu1  ;;  %3059 = vmatpush.bf16.msra.mxu0 %v4315_v0  ;;  %v2831_v63 = vld [vmem:[#allocation2 + $0xa] sm:$0xff] }
 0x396   : > { %v2850_v46 = vpack.c.bf16 %v2831_v63, %v2830_v28 }
 0x397   : > { %v5565_v44 = vadd.f32 %v2366_v9, %v2318_v4  ;;  %v2428_v4 = vld [vmem:[#allocation2 + $0xc1] sm:$0xff]  ;;  %v2429_v9 = vld [vmem:[#allocation2 + $0xc9] sm:$0xff] }
 0x39c   : > { %v2319_v48 = vpop.f32.mrf.mxu2 }
 0x39d   : > { %v2320_v17 = vadd.f32 %v2319_v48, %v2270_v8  ;;  %v2368_v32 = vpop.f32.mrf.mxu3  ;;  %v2273_v22 = vpop.f32.mrf.mxu1 }
 0x39f   : > { %v5567_v15 = vadd.f32 %v2368_v32, %v2320_v17  ;;  %v2440_v17 = vpack.c.bf16 %v2429_v9, %v2428_v4 }
 0x3a0   : > { %2658 = vmatmul.bf16.gmra.mxu1 %v2435_v13 }
 0x3a1   : > { %2707 = vmatmul.bf16.gmra.mxu2 %v2436_v20 }
 0x3a2   : > { %2756 = vmatmul.bf16.gmra.mxu3 %v2437_v57 }
 0x3a4   : > { %v2322_v21 = vpop.f32.mrf.mxu2 }
 0x3a5   : > { %v2323_v33 = vadd.f32 %v2322_v21, %v2273_v22  ;;  %v2371_v5 = vpop.f32.mrf.mxu3  ;;  %v2275_v55 = vpop.f32.mrf.mxu1 }
 0x3a7   : > { %v5575_v43 = vadd.f32 %v2371_v5, %v2323_v33  ;;  %v2832_v5 = vld [vmem:[#allocation2 + $0x1a] sm:$0xff] }
 0x3a8   : > { %v2851_v1 = vpack.c.bf16 %v2833_v2, %v2832_v5 }
 0x3ac   : > { %v2324_v34 = vpop.f32.mrf.mxu2 }
 0x3ad   : > { %v2325_v25 = vadd.f32 %v2324_v34, %v2275_v55  ;;  %v2373_v3 = vpop.f32.mrf.mxu3  ;;  %v2278_v16 = vpop.f32.mrf.mxu1  ;;  %v2430_v55 = vld [vmem:[#allocation2 + $0xd9] sm:$0xff] }
 0x3af   : > { %v5580_v49 = vadd.f32 %v2373_v3, %v2325_v25 }
 0x3b0   : > { %2663 = vmatmul.bf16.gmra.mxu1 %v2436_v20  ;;  %v4314_v20 = vld [vmem:[%s5750_s3 + $0x180] sm:$0xff] }
 0x3b1   : > { %2712 = vmatmul.bf16.gmra.mxu2 %v2437_v57  ;;  %3060 = vmatpush.bf16.msra.mxu0 %v4314_v20 }
 0x3b2   : > { %2761 = vmatmul.bf16.gmra.mxu3 %v2438_v24 }
 0x3b4   : > { %v2327_v14 = vpop.f32.mrf.mxu2  ;;  %3061 = vmatmul.bf16.vlgmr.msra.gmra.mxu0 %v2850_v46 }
 0x3b5   : > { %v2328_v54 = vadd.f32 %v2327_v14, %v2278_v16  ;;  %v2376_v6 = vpop.f32.mrf.mxu3  ;;  %v2280_v61 = vpop.f32.mrf.mxu1  ;;  %v2441_v16 = vpack.c.bf16 %v2431_v7, %v2430_v55 }
 0x3b7   : > { %v5594_v11 = vadd.f32 %v2376_v6, %v2328_v54  ;;  %v2834_v6 = vld [vmem:[#allocation2 + $0x32] sm:$0xff] }
 0x3bc   : > { %v2329_v53 = vpop.f32.mrf.mxu2 }
 0x3bd   : > { %v2330_v38 = vadd.f32 %v2329_v53, %v2280_v61  ;;  %v2378_v13 = vpop.f32.mrf.mxu3  ;;  %v2283_v60 = vpop.f32.mrf.mxu1  ;;  %v2852_v61 = vpack.c.bf16 %v2835_v30, %v2834_v6 }
 0x3bf   : > { %v5602_v36 = vadd.f32 %v2378_v13, %v2330_v38 }
 0x3c0   : > { %2668 = vmatmul.bf16.gmra.mxu1 %v2437_v57 }
 0x3c1   : > { %2717 = vmatmul.bf16.gmra.mxu2 %v2438_v24 }
 0x3c2   : > { %2766 = vmatmul.bf16.gmra.mxu3 %v2439_v19 }
 0x3c4   : > { %v2332_v62 = vpop.f32.mrf.mxu2  ;;  %3066 = vmatmul.bf16.gmra.mxu0 %v2851_v1 }
 0x3c5   : > { %v2333_v42 = vadd.f32 %v2332_v62, %v2283_v60  ;;  %v2381_v52 = vpop.f32.mrf.mxu3  ;;  %v2285_v47 = vpop.f32.mrf.mxu1  ;;  %v2837_v62 = vld [vmem:[#allocation2 + $0x52] sm:$0xff] }
 0x3c7   : > { %v5616_v29 = vadd.f32 %v2381_v52, %v2333_v42  ;;  %v2853_v42 = vpack.c.bf16 %v2837_v62, %v2836_v39 }
 0x3cc   : > { %v2334_v8 = vpop.f32.mrf.mxu2 }
 0x3cd   : > { %v2335_v40 = vadd.f32 %v2334_v8, %v2285_v47  ;;  %v2383_v56 = vpop.f32.mrf.mxu3  ;;  %v2288_v48 = vpop.f32.mrf.mxu1 }
 0x3cf   : > { %v5621_v32 = vadd.f32 %v2383_v56, %v2335_v40  ;;  %v2838_v56 = vld [vmem:[#allocation2 + $0x62] sm:$0xff] }
 0x3d0   : > { %2673 = vmatmul.bf16.gmra.mxu1 %v2438_v24 }
 0x3d1   : > { %2722 = vmatmul.bf16.gmra.mxu2 %v2439_v19 }
 0x3d2   : > { %2771 = vmatmul.bf16.gmra.mxu3 %v2440_v17 }
 0x3d4   : > { %v2337_v22 = vpop.f32.mrf.mxu2  ;;  %3071 = vmatmul.bf16.gmra.mxu0 %v2852_v61 }
 0x3d5   : > { %v2338_v57 = vadd.f32 %v2337_v22, %v2288_v48  ;;  %v2386_v10 = vpop.f32.mrf.mxu3  ;;  %v2290_v21 = vpop.f32.mrf.mxu1 }
 0x3d7   : > { %v5623_v33 = vadd.f32 %v2386_v10, %v2338_v57 }
 0x3dc   : > { %v2339_v34 = vpop.f32.mrf.mxu2 }
 0x3dd   : > { %v2340_v51 = vadd.f32 %v2339_v34, %v2290_v21  ;;  %v2388_v25 = vpop.f32.mrf.mxu3  ;;  %v2293_v3 = vpop.f32.mrf.mxu1 }
 0x3df   : > { %v5625_v24 = vadd.f32 %v2388_v25, %v2340_v51  ;;  %v2840_v51 = vld [vmem:[#allocation2 + $0x7a] sm:$0xff] }
 0x3e0   : > { %2678 = vmatmul.bf16.gmra.mxu1 %v2439_v19 }
 0x3e1   : > { %2727 = vmatmul.bf16.gmra.mxu2 %v2440_v17 }
 0x3e2   : > { %2776 = vmatmul.bf16.gmra.mxu3 %v2441_v16 }
 0x3e4   : > { %v2342_v41 = vpop.f32.mrf.mxu2  ;;  %3076 = vmatmul.bf16.gmra.mxu0 %v2853_v42 }
 0x3e5   : > { %v2343_v31 = vadd.f32 %v2342_v41, %v2293_v3  ;;  %v2391_v14 = vpop.f32.mrf.mxu3  ;;  %v2295_v50 = vpop.f32.mrf.mxu1 }
 0x3e7   : > { %v5627_v54 = vadd.f32 %v2391_v14, %v2343_v31 }
 0x3ec   : > { %v2344_v45 = vpop.f32.mrf.mxu2 }
 0x3ed   : > { %v2345_v35 = vadd.f32 %v2344_v45, %v2295_v50  ;;  %v2393_v12 = vpop.f32.mrf.mxu3  ;;  %v2644_v53 = vpop.f32.mrf.mxu1 }
 0x3ef   : > { %v5629_v37 = vadd.f32 %v2393_v12, %v2345_v35  ;;  %v2842_v12 = vld [vmem:[#allocation2 + $0x92] sm:$0xff] }
 0x3f0   : > { %3110 = vmatmul.bf16.vlgmr.msra.gmra.mxu1 %v2851_v1 }
 0x3f1   : > { %3159 = vmatmul.bf16.vlgmr.msra.gmra.mxu2 %v2852_v61 }
 0x3f4   : > { %v2693_v38 = vpop.f32.mrf.mxu2 }
 0x3f5   : > { %v2694_v13 = vadd.f32 %v2693_v38, %v2644_v53  ;;  %v2742_v60 = vpop.f32.mrf.mxu3  ;;  %v2646_v19 = vpop.f32.mrf.mxu1 }
 0x3f7   : > { %v2743_v26 = vadd.f32 %v2742_v60, %v2694_v13 }
 0x3f9   : > { %v5632_v0 = vadd.f32 %v2743_v26, %v5545_v59  ;;  %v2839_v59 = vld [vmem:[#allocation2 + $0x6a] sm:$0xff] }
 0x3fa   : > { %v2854_v17 = vpack.c.bf16 %v2839_v59, %v2838_v56 }
 0x3fc   : > { %v2695_v52 = vpop.f32.mrf.mxu2  ;;  %3081 = vmatmul.bf16.gmra.mxu0 %v2854_v17 }
 0x3fd   : > { %v2696_v23 = vadd.f32 %v2695_v52, %v2646_v19  ;;  %v2744_v47 = vpop.f32.mrf.mxu3  ;;  %v2649_v20 = vpop.f32.mrf.mxu1 }
 0x3ff   : > { %v2745_v28 = vadd.f32 %v2744_v47, %v2696_v23 }
 0x400   : > { %3115 = vmatmul.bf16.gmra.mxu1 %v2852_v61 }
 0x401   : > { %v5635_v63 = vadd.f32 %v2745_v28, %v5547_v27  ;;  %3164 = vmatmul.bf16.gmra.mxu2 %v2853_v42 }
 0x404   : > { %v2698_v4 = vpop.f32.mrf.mxu2 }
 0x405   : > { %v2699_v9 = vadd.f32 %v2698_v4, %v2649_v20  ;;  %v2747_v46 = vpop.f32.mrf.mxu3  ;;  %v2651_v8 = vpop.f32.mrf.mxu1  ;;  %v2844_v20 = vld [vmem:[#allocation2 + $0xaa] sm:$0xff] }
 0x407   : > { %v2748_v40 = vadd.f32 %v2747_v46, %v2699_v9 }
 0x409   : > { %v5638_v48 = vadd.f32 %v2748_v40, %v5555_v18  ;;  %v2841_v18 = vld [vmem:[#allocation2 + $0x82] sm:$0xff] }
 0x40a   : > { %v2855_v3 = vpack.c.bf16 %v2841_v18, %v2840_v51 }
 0x40c   : > { %v2700_v22 = vpop.f32.mrf.mxu2  ;;  %3086 = vmatmul.bf16.gmra.mxu0 %v2855_v3 }
 0x40d   : > { %v2701_v57 = vadd.f32 %v2700_v22, %v2651_v8  ;;  %v2749_v10 = vpop.f32.mrf.mxu3  ;;  %v2654_v21 = vpop.f32.mrf.mxu1 }
 0x40f   : > { %v2750_v27 = vadd.f32 %v2749_v10, %v2701_v57 }
 0x410   : > { %3120 = vmatmul.bf16.gmra.mxu1 %v2853_v42 }
 0x411   : > { %v5641_v5 = vadd.f32 %v2750_v27, %v5557_v58  ;;  %3169 = vmatmul.bf16.gmra.mxu2 %v2854_v17  ;;  %v2847_v27 = vld [vmem:[#allocation2 + $0xca] sm:$0xff] }
 0x414   : > { %v2703_v2 = vpop.f32.mrf.mxu2 }
 0x415   : > { %v2704_v55 = vadd.f32 %v2703_v2, %v2654_v21  ;;  %v2752_v7 = vpop.f32.mrf.mxu3  ;;  %v2656_v1 = vpop.f32.mrf.mxu1  ;;  %v2846_v21 = vld [vmem:[#allocation2 + $0xc2] sm:$0xff] }
 0x417   : > { %v2753_v34 = vadd.f32 %v2752_v7, %v2704_v55 }
 0x419   : > { %v5644_v25 = vadd.f32 %v2753_v34, %v5565_v44  ;;  %v2843_v44 = vld [vmem:[#allocation2 + $0x9a] sm:$0xff] }
 0x41a   : > { %v2856_v38 = vpack.c.bf16 %v2843_v44, %v2842_v12 }
 0x41c   : > { %v2705_v16 = vpop.f32.mrf.mxu2  ;;  %3091 = vmatmul.bf16.gmra.mxu0 %v2856_v38 }
 0x41d   : > { %v2706_v41 = vadd.f32 %v2705_v16, %v2656_v1  ;;  %v2754_v31 = vpop.f32.mrf.mxu3  ;;  %v2659_v14 = vpop.f32.mrf.mxu1  ;;  %v2858_v1 = vpack.c.bf16 %v2847_v27, %v2846_v21 }
 0x41f   : > { %v2755_v58 = vadd.f32 %v2754_v31, %v2706_v41 }
 0x420   : > { %3125 = vmatmul.bf16.gmra.mxu1 %v2854_v17 }
 0x421   : > { %v5647_v50 = vadd.f32 %v2755_v58, %v5567_v15  ;;  %3174 = vmatmul.bf16.gmra.mxu2 %v2855_v3  ;;  %v2848_v58 = vld [vmem:[#allocation2 + $0xda] sm:$0xff] }
 0x424   : > { %v2708_v6 = vpop.f32.mrf.mxu2 }
 0x425   : > { %v2709_v30 = vadd.f32 %v2708_v6, %v2659_v14  ;;  %v2757_v61 = vpop.f32.mrf.mxu3  ;;  %v2661_v45 = vpop.f32.mrf.mxu1  ;;  %v2849_v6 = vld [vmem:[#allocation2 + $0xe2] sm:$0xff] }
 0x427   : > { %v2758_v35 = vadd.f32 %v2757_v61, %v2709_v30 }
 0x429   : > { %v5650_v53 = vadd.f32 %v2758_v35, %v5575_v43  ;;  %v2845_v43 = vld [vmem:[#allocation2 + $0xb2] sm:$0xff]  ;;  %v2859_v35 = vpack.c.bf16 %v2849_v6, %v2848_v58 }
 0x42a   : > { %v2857_v4 = vpack.c.bf16 %v2845_v43, %v2844_v20 }
 0x42c   : > { %v2710_v13 = vpop.f32.mrf.mxu2  ;;  %3096 = vmatmul.bf16.gmra.mxu0 %v2857_v4 }
 0x42d   : > { %v2711_v60 = vadd.f32 %v2710_v13, %v2661_v45  ;;  %v2759_v19 = vpop.f32.mrf.mxu3  ;;  %v2664_v26 = vpop.f32.mrf.mxu1 }
 0x42f   : > { %v2760_v15 = vadd.f32 %v2759_v19, %v2711_v60 }
 0x430   : > { %3130 = vmatmul.bf16.gmra.mxu1 %v2855_v3 }
 0x431   : > { %v5653_v39 = vadd.f32 %v2760_v15, %v5580_v49  ;;  %3179 = vmatmul.bf16.gmra.mxu2 %v2856_v38  ;;  %v3062_v3 = vpop.f32.mrf.mxu0 }
 0x434   : > { %v2713_v62 = vpop.f32.mrf.mxu2 }
 0x435   : > { %v2714_v42 = vadd.f32 %v2713_v62, %v2664_v26  ;;  %v2762_v52 = vpop.f32.mrf.mxu3  ;;  %v2666_v23 = vpop.f32.mrf.mxu1 }
 0x437   : > { %v2763_v47 = vadd.f32 %v2762_v52, %v2714_v42 }
 0x439   : > { %v5656_v28 = vadd.f32 %v2763_v47, %v5594_v11 }
 0x43c   : > { %v2715_v9 = vpop.f32.mrf.mxu2 }
 0x43d   : > { %v2716_v46 = vadd.f32 %v2715_v9, %v2666_v23  ;;  %v2764_v8 = vpop.f32.mrf.mxu3  ;;  %v2669_v40 = vpop.f32.mrf.mxu1 }
 0x43f   : > { %v2765_v49 = vadd.f32 %v2764_v8, %v2716_v46  ;;  %v5682_v8 = vld [vmem:[%s5751_s4] ss:$0 sm:$0xff] }
 0x440   : > { %3135 = vmatmul.bf16.gmra.mxu1 %v2856_v38 }
 0x441   : > { %v5659_v56 = vadd.f32 %v2765_v49, %v5602_v36  ;;  %3184 = vmatmul.bf16.gmra.mxu2 %v2857_v4 }
 0x444   : > { %v2718_v59 = vpop.f32.mrf.mxu2 }
 0x445   : > { %v2719_v17 = vadd.f32 %v2718_v59, %v2669_v40  ;;  %v2767_v22 = vpop.f32.mrf.mxu3  ;;  %v2671_v57 = vpop.f32.mrf.mxu1 }
 0x447   : > { %v2768_v10 = vadd.f32 %v2767_v22, %v2719_v17 }
 0x449   : > { %v5662_v11 = vadd.f32 %v2768_v10, %v5616_v29 }
 0x44c   : > { %v2720_v2 = vpop.f32.mrf.mxu2 }
 0x44d   : > { %v2721_v55 = vadd.f32 %v2720_v2, %v2671_v57  ;;  %v2769_v7 = vpop.f32.mrf.mxu3  ;;  %v2674_v34 = vpop.f32.mrf.mxu1 }
 0x44f   : > { %v2770_v51 = vadd.f32 %v2769_v7, %v2721_v55 }
 0x450   : > { %3140 = vmatmul.bf16.gmra.mxu1 %v2857_v4 }
 0x451   : > { %v5665_v36 = vadd.f32 %v2770_v51, %v5621_v32  ;;  %3189 = vmatmul.bf16.gmra.mxu2 %v2858_v1  ;;  %v3064_v32 = vpop.f32.mrf.mxu0 }
 0x454   : > { %v2723_v18 = vpop.f32.mrf.mxu2 }
 0x455   : > { %v2724_v16 = vadd.f32 %v2723_v18, %v2674_v34  ;;  %v2772_v41 = vpop.f32.mrf.mxu3  ;;  %v2676_v31 = vpop.f32.mrf.mxu1 }
 0x457   : > { %v2773_v29 = vadd.f32 %v2772_v41, %v2724_v16 }
 0x459   : > { %v5668_v14 = vadd.f32 %v2773_v29, %v5623_v33  ;;  %v3067_v15 = vpop.f32.mrf.mxu0 }
 0x45c   : > { %v2725_v30 = vpop.f32.mrf.mxu2 }
 0x45d   : > { %v2726_v61 = vadd.f32 %v2725_v30, %v2676_v31  ;;  %v2774_v45 = vpop.f32.mrf.mxu3  ;;  %v2679_v12 = vpop.f32.mrf.mxu1 }
 0x45f   : > { %v2775_v44 = vadd.f32 %v2774_v45, %v2726_v61 }
 0x460   : > { %3145 = vmatmul.bf16.gmra.mxu1 %v2858_v1 }
 0x461   : > { %v5671_v38 = vadd.f32 %v2775_v44, %v5625_v24  ;;  %3194 = vmatmul.bf16.gmra.mxu2 %v2859_v35  ;;  %v3069_v4 = vpop.f32.mrf.mxu0 }
 0x464   : > { %v2728_v13 = vpop.f32.mrf.mxu2 }
 0x465   : > { %v2729_v60 = vadd.f32 %v2728_v13, %v2679_v12  ;;  %v2777_v19 = vpop.f32.mrf.mxu3  ;;  %v2681_v26 = vpop.f32.mrf.mxu1 }
 0x467   : > { %v2778_v33 = vadd.f32 %v2777_v19, %v2729_v60 }
 0x469   : > { %v5674_v62 = vadd.f32 %v2778_v33, %v5627_v54 }
 0x46c   : > { %v2730_v42 = vpop.f32.mrf.mxu2 }
 0x46d   : > { %v2731_v52 = vadd.f32 %v2730_v42, %v2681_v26  ;;  %v2779_v23 = vpop.f32.mrf.mxu3  ;;  %v3111_v47 = vpop.f32.mrf.mxu1 }
 0x46e   : > { %v3112_v43 = vadd.f32 %v3111_v47, %v3062_v3 }
 0x46f   : > { %v2780_v20 = vadd.f32 %v2779_v23, %v2731_v52 }
 0x471   : > { %v5677_v24 = vadd.f32 %v2780_v20, %v5629_v37  ;;  %v3072_v37 = vpop.f32.mrf.mxu0 }
 0x474   : > { %v3160_v9 = vpop.f32.mrf.mxu2 }
 0x475   : > { %v3161_v46 = vadd.f32 %v3160_v9, %v3112_v43  ;;  %v3113_v54 = vpop.f32.mrf.mxu1 }
 0x476   : > { %v3114_v17 = vadd.f32 %v3113_v54, %v3064_v32 }
 0x477   : > { %v3216_v40 = vadd.f32 %v3161_v46, %v5632_v0 }
 0x479   : > { %v3268_v49 = vadd.f32 %v5682_v8, %v3216_v40  ;;  %v3074_v34 = vpop.f32.mrf.mxu0 }
 0x47b   : > { %v3284_v59 = vmax.f32 %v3268_v49, 0.0 }
 0x47c   : > { %v3162_v22 = vpop.f32.mrf.mxu2 }
 0x47d   : > { %3300 = vst [vmem:[%s4557_s28] sm:$0xff] %v3284_v59  ;;  %v3163_v57 = vadd.f32 %v3162_v22, %v3114_v17  ;;  %v3116_v10 = vpop.f32.mrf.mxu1 }
 0x47e   : > { %v3117_v2 = vadd.f32 %v3116_v10, %v3067_v15 }
 0x47f   : > { %v3217_v21 = vadd.f32 %v3163_v57, %v5635_v63 }
 0x481   : > { %v3269_v27 = vadd.f32 %v5682_v8, %v3217_v21  ;;  %v3077_v58 = vpop.f32.mrf.mxu0 }
 0x483   : > { %v3285_v55 = vmax.f32 %v3269_v27, 0.0 }
 0x484   : > { %v3165_v7 = vpop.f32.mrf.mxu2 }
 0x485   : > { %3301 = vst [vmem:[%s4557_s28 + $0x8] sm:$0xff] %v3285_v55  ;;  %v3166_v1 = vadd.f32 %v3165_v7, %v3117_v2  ;;  %v3118_v0 = vpop.f32.mrf.mxu1 }
 0x486   : > { %v3119_v16 = vadd.f32 %v3118_v0, %v3069_v4 }
 0x487   : > { %v3218_v51 = vadd.f32 %v3166_v1, %v5638_v48 }
 0x489   : > { %v3270_v18 = vadd.f32 %v5682_v8, %v3218_v51  ;;  %v3079_v44 = vpop.f32.mrf.mxu0 }
 0x48b   : > { %v3286_v3 = vmax.f32 %v3270_v18, 0.0 }
 0x48c   : > { %v3167_v41 = vpop.f32.mrf.mxu2 }
 0x48d   : > { %3302 = vst [vmem:[%s4557_s28 + $0x10] sm:$0xff] %v3286_v3  ;;  %v3168_v31 = vadd.f32 %v3167_v41, %v3119_v16  ;;  %v3121_v63 = vpop.f32.mrf.mxu1 }
 0x48e   : > { %v3122_v30 = vadd.f32 %v3121_v63, %v3072_v37 }
 0x48f   : > { %v3219_v29 = vadd.f32 %v3168_v31, %v5641_v5 }
 0x491   : > { %v3271_v6 = vadd.f32 %v5682_v8, %v3219_v29  ;;  %v3082_v47 = vpop.f32.mrf.mxu0 }
 0x493   : > { %v3287_v61 = vmax.f32 %v3271_v6, 0.0 }
 0x494   : > { %v3170_v45 = vpop.f32.mrf.mxu2 }
 0x495   : > { %3303 = vst [vmem:[%s4557_s28 + $0x18] sm:$0xff] %v3287_v61  ;;  %v3171_v35 = vadd.f32 %v3170_v45, %v3122_v30  ;;  %v3123_v48 = vpop.f32.mrf.mxu1 }
 0x496   : > { %v3124_v60 = vadd.f32 %v3123_v48, %v3074_v34 }
 0x497   : > { %v3220_v12 = vadd.f32 %v3171_v35, %v5644_v25 }
 0x499   : > { %v3272_v32 = vadd.f32 %v5682_v8, %v3220_v12  ;;  %v3084_v49 = vpop.f32.mrf.mxu0 }
 0x49b   : > { %v3288_v13 = vmax.f32 %v3272_v32, 0.0 }
 0x49c   : > { %v3172_v19 = vpop.f32.mrf.mxu2 }
 0x49d   : > { %3304 = vst [vmem:[%s4557_s28 + $0x20] sm:$0xff] %v3288_v13  ;;  %v3173_v5 = vadd.f32 %v3172_v19, %v3124_v60  ;;  %v3126_v26 = vpop.f32.mrf.mxu1 }
 0x49e   : > { %v3127_v42 = vadd.f32 %v3126_v26, %v3077_v58 }
 0x49f   : > { %v3221_v33 = vadd.f32 %v3173_v5, %v5647_v50 }
 0x4a1   : > { %v3273_v15 = vadd.f32 %v5682_v8, %v3221_v33  ;;  %v3087_v27 = vpop.f32.mrf.mxu0 }
 0x4a3   : > { %v3289_v52 = vmax.f32 %v3273_v15, 0.0 }
 0x4a4   : > { %v3175_v23 = vpop.f32.mrf.mxu2 }
 0x4a5   : > { %3305 = vst [vmem:[%s4557_s28 + $0x28] sm:$0xff] %v3289_v52  ;;  %v3176_v25 = vadd.f32 %v3175_v23, %v3127_v42  ;;  %v3128_v20 = vpop.f32.mrf.mxu1 }
 0x4a6   : > { %v3129_v46 = vadd.f32 %v3128_v20, %v3079_v44 }
 0x4a7   : > { %v3222_v43 = vadd.f32 %v3176_v25, %v5650_v53 }
 0x4a9   : > { %v3274_v4 = vadd.f32 %v5682_v8, %v3222_v43  ;;  %v3089_v3 = vpop.f32.mrf.mxu0 }
 0x4ab   : > { %v3290_v9 = vmax.f32 %v3274_v4, 0.0 }
 0x4ac   : > { %v3177_v54 = vpop.f32.mrf.mxu2 }
 0x4ad   : > { %3306 = vst [vmem:[%s4557_s28 + $0x30] sm:$0xff] %v3290_v9  ;;  %v3178_v40 = vadd.f32 %v3177_v54, %v3129_v46  ;;  %v3131_v50 = vpop.f32.mrf.mxu1 }
 0x4ae   : > { %v3132_v22 = vadd.f32 %v3131_v50, %v3082_v47 }
 0x4af   : > { %v3223_v59 = vadd.f32 %v3178_v40, %v5653_v39 }
 0x4b1   : > { %v3275_v17 = vadd.f32 %v5682_v8, %v3223_v59  ;;  %v3092_v30 = vpop.f32.mrf.mxu0 }
 0x4b3   : > { %v3291_v37 = vmax.f32 %v3275_v17, 0.0 }
 0x4b4   : > { %v3180_v57 = vpop.f32.mrf.mxu2 }
 0x4b5   : > { %3307 = vst [vmem:[%s4557_s28 + $0x38] sm:$0xff] %v3291_v37  ;;  %v3181_v10 = vadd.f32 %v3180_v57, %v3132_v22  ;;  %v3133_v53 = vpop.f32.mrf.mxu1 }
 0x4b6   : > { %v3134_v7 = vadd.f32 %v3133_v53, %v3084_v49 }
 0x4b7   : > { %v3224_v21 = vadd.f32 %v3181_v10, %v5656_v28 }
 0x4b9   : > { %v3276_v2 = vadd.f32 %v5682_v8, %v3224_v21 }
 0x4bb   : > { %v3292_v55 = vmax.f32 %v3276_v2, 0.0 }
 0x4bc   : > { %v3182_v1 = vpop.f32.mrf.mxu2 }
 0x4bd   : > { %3308 = vst [vmem:[%s4557_s28 + $0x40] sm:$0xff] %v3292_v55  ;;  %v3183_v0 = vadd.f32 %v3182_v1, %v3134_v7  ;;  %v3136_v39 = vpop.f32.mrf.mxu1 }
 0x4be   : > { %v3137_v18 = vadd.f32 %v3136_v39, %v3087_v27 }
 0x4bf   : > { %v3225_v34 = vadd.f32 %v3183_v0, %v5659_v56 }
 0x4c1   : > { %v3277_v51 = vadd.f32 %v5682_v8, %v3225_v34 }
 0x4c3   : > { %v3293_v16 = vmax.f32 %v3277_v51, 0.0 }
 0x4c4   : > { %v3185_v41 = vpop.f32.mrf.mxu2 }
 0x4c5   : > { %3309 = vst [vmem:[%s4557_s28 + $0x48] sm:$0xff] %v3293_v16  ;;  %v3186_v28 = vadd.f32 %v3185_v41, %v3137_v18  ;;  %v3138_v31 = vpop.f32.mrf.mxu1 }
 0x4c6   : > { %v3139_v6 = vadd.f32 %v3138_v31, %v3089_v3 }
 0x4c7   : > { %v3226_v63 = vadd.f32 %v3186_v28, %v5662_v11  ;;  %v3094_v11 = vpop.f32.mrf.mxu0 }
 0x4c9   : > { %v3278_v29 = vadd.f32 %v5682_v8, %v3226_v63 }
 0x4cb   : > { %v3294_v58 = vmax.f32 %v3278_v29, 0.0 }
 0x4cc   : > { %v3187_v61 = vpop.f32.mrf.mxu2 }
 0x4cd   : > { %3310 = vst [vmem:[%s4557_s28 + $0x50] sm:$0xff] %v3294_v58  ;;  %v3188_v56 = vadd.f32 %v3187_v61, %v3139_v6  ;;  %v3141_v45 = vpop.f32.mrf.mxu1 }
 0x4ce   : > { %v3142_v12 = vadd.f32 %v3141_v45, %v3092_v30 }
 0x4cf   : > { %v3227_v35 = vadd.f32 %v3188_v56, %v5665_v36  ;;  %v3097_v23 = vpop.f32.mrf.mxu0 }
 0x4d1   : > { %v3279_v48 = vadd.f32 %v5682_v8, %v3227_v35 }
 0x4d3   : > { %v3295_v32 = vmax.f32 %v3279_v48, 0.0 }
 0x4d4   : > { %v3190_v44 = vpop.f32.mrf.mxu2 }
 0x4d5   : > { %3311 = vst [vmem:[%s4557_s28 + $0x58] sm:$0xff] %v3295_v32  ;;  %v3191_v13 = vadd.f32 %v3190_v44, %v3142_v12  ;;  %v3143_v60 = vpop.f32.mrf.mxu1 }
 0x4d6   : > { %v3144_v33 = vadd.f32 %v3143_v60, %v3094_v11 }
 0x4d7   : > { %v3228_v19 = vadd.f32 %v3191_v13, %v5668_v14  ;;  %v3099_v54 = vpop.f32.mrf.mxu0 }
 0x4d9   : > { %v3280_v5 = vadd.f32 %v5682_v8, %v3228_v19 }
 0x4db   : > { %v3296_v26 = vmax.f32 %v3280_v5, 0.0 }
 0x4dc   : > { %v3192_v15 = vpop.f32.mrf.mxu2 }
 0x4dd   : > { %3312 = vst [vmem:[%s4557_s28 + $0x60] sm:$0xff] %v3296_v26  ;;  %v3193_v42 = vadd.f32 %v3192_v15, %v3144_v33  ;;  %v3146_v36 = vpop.f32.mrf.mxu1 }
 0x4de   : > { %v3147_v25 = vadd.f32 %v3146_v36, %v3097_v23 }
 0x4df   : > { %v3229_v52 = vadd.f32 %v3193_v42, %v5671_v38 }
 0x4e1   : > { %v3281_v47 = vadd.f32 %v5682_v8, %v3229_v52 }
 0x4e3   : > { %v3297_v20 = vmax.f32 %v3281_v47, 0.0 }
 0x4e4   : > { %v3195_v43 = vpop.f32.mrf.mxu2 }
 0x4e5   : > { %3313 = vst [vmem:[%s4557_s28 + $0x68] sm:$0xff] %v3297_v20  ;;  %v3196_v14 = vadd.f32 %v3195_v43, %v3147_v25  ;;  %v3148_v9 = vpop.f32.mrf.mxu1 }
 0x4e6   : > { %v3149_v50 = vadd.f32 %v3148_v9, %v3099_v54 }
 0x4e7   : > { %v3230_v4 = vadd.f32 %v3196_v14, %v5674_v62 }
 0x4e9   : > { %v3282_v46 = vadd.f32 %v5682_v8, %v3230_v4 }
 0x4eb   : > { %v3298_v40 = vmax.f32 %v3282_v46, 0.0 }
 0x4ec   : > { %v3197_v49 = vpop.f32.mrf.mxu2 }
 0x4ed   : > { %3314 = vst [vmem:[%s4557_s28 + $0x70] sm:$0xff] %v3298_v40  ;;  %v3198_v38 = vadd.f32 %v3197_v49, %v3149_v50 }
 0x4ef   : > { %v3231_v59 = vadd.f32 %v3198_v38, %v5677_v24 }
 0x4f1   : > { %v3283_v17 = vadd.f32 %v5682_v8, %v3231_v59 }
 0x4f3   : > { %v3299_v22 = vmax.f32 %v3283_v17, 0.0 }
 0x4f5   : > { %3315 = vst [vmem:[%s4557_s28 + $0x78] sm:$0xff] %v3299_v22 }
 0x4f6 PF: > { %s15_s22 = sadd.s32 1, %s4466_s22   ;;  %s5859_s18 = smov %s4458_s20 }
 0x4f7   : > { %p12_p9 = scmp.ge.s32.totalorder %s15_s22, 6   ;;  %s5860_s19 = smov %s4462_s21 }
 0x4f8   : > { %s5861_s20 = smov %s5864_s23  ;;  %s5862_s21 = smov %s5868_s24 }
 0x4f9   :  { %14 = sbr.rel (!%p12_p9) target bundleno = 3 (0x3), region = 84 }

</bundles_post_ra>
